<compile_context>
chip_gen: v7x
topology: tpu7x:2x2x1
jax: 0.10.0
libtpu: 0.0.40
codegen_flags: <defaults>
</compile_context>

<pallas_src>
import functools

import jax
import jax.numpy as jnp
from jax.experimental import pallas as pl
from jax.experimental.pallas import tpu as pltpu

BN_EPS = 1e-5
LRELU_SLOPE = 0.2


# ---------------------------------------------------------------------------
# Kernels
# ---------------------------------------------------------------------------
def _matmul_stats_kernel(p_ref, w_ref, g_ref, beta_ref, y_ref, sc_ref, *, n_rows):
    """Pass A: y = patches @ W (MXU, bf16 in / f32 acc); accumulate per-channel
    sum / sum_sq across the row-tile grid; last tile folds BN into (a, c)."""
    i = pl.program_id(0)

    @pl.when(i == 0)
    def _init():
        sc_ref[...] = jnp.zeros_like(sc_ref)

    y = jnp.dot(p_ref[...], w_ref[...], preferred_element_type=jnp.float32)
    y_ref[...] = y

    # Mask rows of a partial last tile out of the statistics.
    tm = y.shape[0]
    row = i * tm + jax.lax.broadcasted_iota(jnp.int32, (tm, 1), 0)
    ym = jnp.where(row < n_rows, y, 0.0)
    part = jnp.concatenate(
        [jnp.sum(ym, axis=0, keepdims=True),
         jnp.sum(ym * ym, axis=0, keepdims=True)], axis=0)
    sc_ref[...] += part

    @pl.when(i == pl.num_programs(0) - 1)
    def _finalize():
        inv_n = 1.0 / float(n_rows)
        mean = sc_ref[0:1, :] * inv_n
        var = sc_ref[1:2, :] * inv_n - mean * mean      # biased, torch BN train
        a = g_ref[...] * jax.lax.rsqrt(var + BN_EPS)
        c = beta_ref[...] - mean * a
        sc_ref[...] = jnp.concatenate([a, c], axis=0)


def _bn_lrelu_kernel(y_ref, sc_ref, o_ref):
    """Pass B (block 1): folded BN affine + LeakyReLU, bf16 out."""
    a = sc_ref[0:1, :]
    c = sc_ref[1:2, :]
    z = y_ref[...] * a + c
    o_ref[...] = jnp.maximum(z, LRELU_SLOPE * z).astype(o_ref.dtype)


def _bn_lrelu_final_kernel(y_ref, sc_ref, w3_ref, b3_ref, o_ref):
    """Pass B (block 2) fused with the final conv: normalize + LeakyReLU the
    (TN, R, C) block-2 output and reduce against the final conv weights."""
    a = sc_ref[0:1, :][None]                         # (1, 1, C)
    c = sc_ref[1:2, :][None]
    z = y_ref[...] * a + c                           # (TN, R, C)
    act = jnp.maximum(z, LRELU_SLOPE * z)
    t = act * w3_ref[...][None]                      # (TN, R, C)
    red = jnp.sum(jnp.sum(t, axis=-1, keepdims=True), axis=1)   # (TN, 1)
    o_ref[...] = red + b3_ref[0, 0]


# ---------------------------------------------------------------------------
# Wrappers
# ---------------------------------------------------------------------------
def _im2col_nhwc(x, k, s):
    """NHWC im2col; K ordered (kh, kw, cin); rows ordered (n, oh, ow)."""
    N, H, W, C = x.shape
    OH = (H - k) // s + 1
    OW = (W - k) // s + 1
    cols = []
    for kh in range(k):
        for kw in range(k):
            cols.append(x[:, kh:kh + s * (OH - 1) + 1:s,
                          kw:kw + s * (OW - 1) + 1:s, :])
    p = jnp.concatenate(cols, axis=-1)               # (N, OH, OW, k*k*C)
    return p.reshape(N * OH * OW, k * k * C), OH, OW


def conv_bn_stats(x_nhwc, w, gamma, beta, *, stride=2, tile_m=512):
    """Pass A of one disc block: returns raw conv y (M, Cout) f32 and the folded
    BN affine (2, Cout) = [a; c].  Conv bias is dropped (cancels under BN)."""
    Cout, Cin, k, _ = w.shape
    patches, OH, OW = _im2col_nhwc(x_nhwc, k, stride)
    M, K = patches.shape
    patches = patches.astype(jnp.bfloat16)
    wm = jnp.transpose(w, (2, 3, 1, 0)).reshape(K, Cout).astype(jnp.bfloat16)

    tm = min(tile_m, M)
    y, sc = pl.pallas_call(
        functools.partial(_matmul_stats_kernel, n_rows=M),
        out_shape=(jax.ShapeDtypeStruct((M, Cout), jnp.float32),
                   jax.ShapeDtypeStruct((2, Cout), jnp.float32)),
        grid=(pl.cdiv(M, tm),),
        in_specs=[
            pl.BlockSpec((tm, K), lambda i: (i, 0)),     # streamed row tiles
            pl.BlockSpec((K, Cout), lambda i: (0, 0)),   # weights resident
            pl.BlockSpec((1, Cout), lambda i: (0, 0)),   # gamma resident
            pl.BlockSpec((1, Cout), lambda i: (0, 0)),   # beta resident
        ],
        out_specs=(
            pl.BlockSpec((tm, Cout), lambda i: (i, 0)),
            pl.BlockSpec((2, Cout), lambda i: (0, 0)),   # cross-tile accumulator
        ),
        compiler_params=pltpu.CompilerParams(
            dimension_semantics=("arbitrary",)),
    )(patches, wm, gamma.reshape(1, Cout), beta.reshape(1, Cout))
    return y, sc, OH, OW


def bn_lrelu(y, sc, *, tile_m=1024):
    """Pass B of block 1: normalize + LeakyReLU, streamed over row tiles."""
    M, C = y.shape
    tm = min(tile_m, M)
    return pl.pallas_call(
        _bn_lrelu_kernel,
        out_shape=jax.ShapeDtypeStruct((M, C), jnp.bfloat16),
        grid=(pl.cdiv(M, tm),),
        in_specs=[pl.BlockSpec((tm, C), lambda i: (i, 0)),
                  pl.BlockSpec((2, C), lambda i: (0, 0))],
        out_specs=pl.BlockSpec((tm, C), lambda i: (i, 0)),
        compiler_params=pltpu.CompilerParams(
            dimension_semantics=("parallel",)),
    )(y, sc)


def bn_lrelu_final(y3d, sc, w3, b3, OH, OW, *, stride=2, tile_n=128):
    """Pass B of block 2 fused with the final conv (block 3)."""
    N, R, C = y3d.shape
    k = w3.shape[-1]
    assert (OH - k) // stride + 1 == 1 and (OW - k) // stride + 1 == 1, (
        "fused final conv expects a 1x1 output (MNIST 28x28 path)")
    # (2H,4,4) -> (4,4,2H) -> zero-pad to (OH,OW,2H) -> (R,2H); row = oh*OW+ow.
    w3_mat = jnp.transpose(w3[0], (1, 2, 0))
    w3_mat = jnp.pad(w3_mat, ((0, OH - k), (0, OW - k), (0, 0)))
    w3_mat = w3_mat.reshape(R, C).astype(jnp.float32)

    tn = min(tile_n, N)
    return pl.pallas_call(
        _bn_lrelu_final_kernel,
        out_shape=jax.ShapeDtypeStruct((N, 1), jnp.float32),
        grid=(pl.cdiv(N, tn),),
        in_specs=[
            pl.BlockSpec((tn, R, C), lambda i: (i, 0, 0)),
            pl.BlockSpec((2, C), lambda i: (0, 0)),
            pl.BlockSpec((R, C), lambda i: (0, 0)),
            pl.BlockSpec(memory_space=pltpu.MemorySpace.SMEM),   # b3 scalar
        ],
        out_specs=pl.BlockSpec((tn, 1), lambda i: (i, 0)),
        compiler_params=pltpu.CompilerParams(
            dimension_semantics=("parallel",)),
    )(y3d, sc, w3_mat, b3.reshape(1, 1))


# ---------------------------------------------------------------------------
# Forward pass, parameters, pure-JAX reference
# ---------------------------------------------------------------------------
def discriminator_forward(x_nchw, params):
    """(N, 1, 28, 28) NCHW -> (N, 1); matches the PyTorch module in train mode."""
    x = jnp.transpose(x_nchw, (0, 2, 3, 1))              # NHWC once, kept throughout
    N = x.shape[0]

    # block 1
    y1, sc1, oh1, ow1 = conv_bn_stats(x, params["w1"], params["g1"], params["bt1"])
    a1 = bn_lrelu(y1, sc1).reshape(N, oh1, ow1, -1)      # free reshape (NHWC rows)

    # block 2 + fused block 3
    y2, sc2, oh2, ow2 = conv_bn_stats(a1, params["w2"], params["g2"], params["bt2"])
    y2 = y2.reshape(N, oh2 * ow2, -1)                    # free reshape
    out = bn_lrelu_final(y2, sc2, params["w3"], params["b3"], oh2, ow2)
    return out                                           # (N, 1) == view(N, -1)


def init_params(key, im_channel=1, hidden_dim=64):
    k1, k2, k3, k4, k5, k6 = jax.random.split(key, 6)
    h = hidden_dim
    return {
        "w1": 0.02 * jax.random.normal(k1, (h, im_channel, 4, 4), jnp.float32),
        "b1": 0.01 * jax.random.normal(k4, (h,), jnp.float32),
        "g1": jnp.ones((h,), jnp.float32),
        "bt1": jnp.zeros((h,), jnp.float32),
        "w2": 0.02 * jax.random.normal(k2, (2 * h, h, 4, 4), jnp.float32),
        "b2": 0.01 * jax.random.normal(k5, (2 * h,), jnp.float32),
        "g2": jnp.ones((2 * h,), jnp.float32),
        "bt2": jnp.zeros((2 * h,), jnp.float32),
        "w3": 0.02 * jax.random.normal(k3, (1, 2 * h, 4, 4), jnp.float32),
        "b3": 0.01 * jax.random.normal(k6, (1,), jnp.float32),
    }


def reference_forward(x, params):
    """Pure-JAX/XLA reference of the PyTorch forward (train-mode BN).  Uses the
    same bf16 casts at conv inputs as the Pallas path so the check is tight;
    conv biases b1/b2 are included (they cancel under BN)."""
    def conv(h, w, b, stride, bf16):
        if bf16:
            h = h.astype(jnp.bfloat16)
            w = w.astype(jnp.bfloat16)
        y = jax.lax.conv_general_dilated(
            h, w, (stride, stride), "VALID",
            dimension_numbers=("NCHW", "OIHW", "NCHW"),
            preferred_element_type=jnp.float32)
        return y + b.reshape(1, -1, 1, 1)

    def bn_lrelu_ref(y, g, bt):
        mean = jnp.mean(y, axis=(0, 2, 3), keepdims=True)
        var = jnp.mean((y - mean) ** 2, axis=(0, 2, 3), keepdims=True)
        z = (y - mean) * jax.lax.rsqrt(var + BN_EPS)
        z = z * g.reshape(1, -1, 1, 1) + bt.reshape(1, -1, 1, 1)
        return jnp.where(z >= 0, z, LRELU_SLOPE * z)

    h = bn_lrelu_ref(conv(x, params["w1"], params["b1"], 2, True),
                     params["g1"], params["bt1"])
    h = bn_lrelu_ref(conv(h, params["w2"], params["b2"], 2, True),
                     params["g2"], params["bt2"])
    h = conv(h, params["w3"], params["b3"], 2, False)
    return h.reshape(h.shape[0], -1)


if __name__ == "__main__":
    key = jax.random.PRNGKey(0)
    pkey, xkey = jax.random.split(key)
    params = init_params(pkey, im_channel=1, hidden_dim=64)
    x = jax.random.normal(xkey, (2, 1, 28, 28), jnp.float32)   # MNIST-shaped

    fwd = jax.jit(discriminator_forward)
    out = jax.block_until_ready(fwd(x, params))

    assert out.shape == (2, 1), out.shape
    assert bool(jnp.all(jnp.isfinite(out)))

    ref = reference_forward(x, params)
    assert bool(jnp.allclose(out, ref, rtol=1e-2, atol=1e-2)), (out, ref)
    print("KERNEL_OK")
</pallas_src>

<mosaic_0001>
module attributes {stable_mosaic.version = 11 : i64} {
  func.func @_matmul_stats_kernel(%arg0: i32, %arg1: memref<338x16xbf16, #tpu.memory_space<vmem>>, %arg2: memref<16x64xbf16, #tpu.memory_space<vmem>>, %arg3: memref<1x64xf32, #tpu.memory_space<vmem>>, %arg4: memref<1x64xf32, #tpu.memory_space<vmem>>, %arg5: memref<338x64xf32, #tpu.memory_space<vmem>>, %arg6: memref<2x64xf32, #tpu.memory_space<vmem>>) attributes {dimension_semantics = [#tpu.dimension_semantics<arbitrary>], iteration_bounds = array<i64: 1>, scalar_prefetch = 0 : i64, scratch_operands = 0 : i64, tpu.core_type = #tpu.core_type<tc>, window_params = [{transform_indices = @transform_0, window_bounds = array<i64: 338, 16>}, {pipeline_mode = #tpu.pipeline_mode<synchronous>, transform_indices = @transform_1, window_bounds = array<i64: 16, 64>}, {pipeline_mode = #tpu.pipeline_mode<synchronous>, transform_indices = @transform_2, window_bounds = array<i64: 1, 64>}, {pipeline_mode = #tpu.pipeline_mode<synchronous>, transform_indices = @transform_3, window_bounds = array<i64: 1, 64>}, {transform_indices = @transform_4, window_bounds = array<i64: 338, 64>}, {pipeline_mode = #tpu.pipeline_mode<synchronous>, transform_indices = @transform_5, window_bounds = array<i64: 2, 64>}]} {
    %c0_i32 = arith.constant 0 : i32
    %0 = arith.cmpi eq, %arg0, %c0_i32 : i32
    %1 = arith.extui %0 : i1 to i32
    %c0_i32_0 = arith.constant 0 : i32
    %2 = arith.cmpi ne, %1, %c0_i32_0 : i32
    scf.if %2 {
      %cst_16 = arith.constant 0.000000e+00 : f32
      %29 = vector.broadcast %cst_16 : f32 to vector<2x64xf32>
      %c0_17 = arith.constant 0 : index
      %c0_18 = arith.constant 0 : index
      %30 = vector.load %arg6[%c0_17, %c0_18] : memref<2x64xf32, #tpu.memory_space<vmem>>, vector<2x64xf32>
      tpu.vector_store %arg6[%c0_17, %c0_18], %29 {strides = array<i32>} : memref<2x64xf32, #tpu.memory_space<vmem>>, vector<2x64xf32>,
    } else {
    }
    %c0 = arith.constant 0 : index
    %c0_1 = arith.constant 0 : index
    %3 = vector.load %arg1[%c0, %c0_1] : memref<338x16xbf16, #tpu.memory_space<vmem>>, vector<338x16xbf16>
    %c0_2 = arith.constant 0 : index
    %c0_3 = arith.constant 0 : index
    %4 = vector.load %arg2[%c0_2, %c0_3] : memref<16x64xbf16, #tpu.memory_space<vmem>>, vector<16x64xbf16>
    %cst = arith.constant dense<0.000000e+00> : vector<338x64xf32>
    %5 = tpu.matmul %3, %4, %cst {dimension_numbers = #tpu.dot_dimension_numbers<[1], [0], [0], [1], [0, 0, 1, 1], [], []>} : vector<338x16xbf16>, vector<16x64xbf16>, vector<338x64xf32> -> vector<338x64xf32>
    %c0_4 = arith.constant 0 : index
    %c0_5 = arith.constant 0 : index
    %6 = vector.load %arg5[%c0_4, %c0_5] : memref<338x64xf32, #tpu.memory_space<vmem>>, vector<338x64xf32>
    tpu.vector_store %arg5[%c0_4, %c0_5], %5 {strides = array<i32>} : memref<338x64xf32, #tpu.memory_space<vmem>>, vector<338x64xf32>,
    %c338_i32 = arith.constant 338 : i32
    %7 = arith.muli %arg0, %c338_i32 : i32
    %8 = tpu.iota {dimensions = array<i32: 0>} : vector<338x1xi32>
    %9 = vector.broadcast %7 : i32 to vector<338x1xi32>
    %10 = arith.addi %9, %8 : vector<338x1xi32>
    %c338_i32_6 = arith.constant 338 : i32
    %11 = vector.broadcast %c338_i32_6 : i32 to vector<338x1xi32>
    %12 = arith.cmpi slt, %10, %11 : vector<338x1xi32>
    %cst_7 = arith.constant 0.000000e+00 : f32
    %13 = vector.shape_cast %12 : vector<338x1xi1> to vector<338x1xi1>
    %14 = vector.broadcast %13 : vector<338x1xi1> to vector<338x64xi1>
    %15 = vector.broadcast %cst_7 : f32 to vector<338x64xf32>
    %16 = arith.select %14, %5, %15 : vector<338x64xi1>, vector<338x64xf32>
    %cst_8 = arith.constant dense<0.000000e+00> : vector<64xf32>
    %17 = vector.multi_reduction <add>, %16, %cst_8 [0] : vector<338x64xf32> to vector<64xf32>
    %18 = vector.shape_cast %17 : vector<64xf32> to vector<1x64xf32>
    %19 = arith.mulf %16, %16 : vector<338x64xf32>
    %cst_9 = arith.constant dense<0.000000e+00> : vector<64xf32>
    %20 = vector.multi_reduction <add>, %19, %cst_9 [0] : vector<338x64xf32> to vector<64xf32>
    %21 = vector.shape_cast %20 : vector<64xf32> to vector<1x64xf32>
    %22 = tpu.concatenate %18, %21 in 0 : vector<1x64xf32>, vector<1x64xf32> -> vector<2x64xf32>
    %c0_10 = arith.constant 0 : index
    %c0_11 = arith.constant 0 : index
    %23 = vector.load %arg6[%c0_10, %c0_11] : memref<2x64xf32, #tpu.memory_space<vmem>>, vector<2x64xf32>
    %24 = arith.addf %23, %22 : vector<2x64xf32>
    %c0_12 = arith.constant 0 : index
    %c0_13 = arith.constant 0 : index
    %25 = vector.load %arg6[%c0_12, %c0_13] : memref<2x64xf32, #tpu.memory_space<vmem>>, vector<2x64xf32>
    tpu.vector_store %arg6[%c0_12, %c0_13], %24 {strides = array<i32>} : memref<2x64xf32, #tpu.memory_space<vmem>>, vector<2x64xf32>,
    %c0_i32_14 = arith.constant 0 : i32
    %26 = arith.cmpi eq, %arg0, %c0_i32_14 : i32
    %27 = arith.extui %26 : i1 to i32
    %c0_i32_15 = arith.constant 0 : i32
    %28 = arith.cmpi ne, %27, %c0_i32_15 : i32
    scf.if %28 {
      %c0_16 = arith.constant 0 : index
      %c0_17 = arith.constant 0 : index
      %29 = vector.load %arg6[%c0_16, %c0_17] : memref<2x64xf32, #tpu.memory_space<vmem>>, vector<1x64xf32>
      %cst_18 = arith.constant 2.958580e-03 : f32
      %30 = vector.broadcast %cst_18 : f32 to vector<1x64xf32>
      %31 = arith.mulf %29, %30 : vector<1x64xf32>
      %c1 = arith.constant 1 : index
      %c0_19 = arith.constant 0 : index
      %32 = vector.load %arg6[%c1, %c0_19] : memref<2x64xf32, #tpu.memory_space<vmem>>, vector<1x64xf32>
      %cst_20 = arith.constant 2.958580e-03 : f32
      %33 = vector.broadcast %cst_20 : f32 to vector<1x64xf32>
      %34 = arith.mulf %32, %33 : vector<1x64xf32>
      %35 = arith.mulf %31, %31 : vector<1x64xf32>
      %36 = arith.subf %34, %35 : vector<1x64xf32>
      %c0_21 = arith.constant 0 : index
      %c0_22 = arith.constant 0 : index
      %37 = vector.load %arg3[%c0_21, %c0_22] : memref<1x64xf32, #tpu.memory_space<vmem>>, vector<1x64xf32>
      %cst_23 = arith.constant 9.99999974E-6 : f32
      %38 = vector.broadcast %cst_23 : f32 to vector<1x64xf32>
      %39 = arith.addf %36, %38 : vector<1x64xf32>
      %40 = math.rsqrt %39 : vector<1x64xf32>
      %41 = arith.mulf %37, %40 : vector<1x64xf32>
      %c0_24 = arith.constant 0 : index
      %c0_25 = arith.constant 0 : index
      %42 = vector.load %arg4[%c0_24, %c0_25] : memref<1x64xf32, #tpu.memory_space<vmem>>, vector<1x64xf32>
      %43 = arith.mulf %31, %41 : vector<1x64xf32>
      %44 = arith.subf %42, %43 : vector<1x64xf32>
      %45 = tpu.concatenate %41, %44 in 0 : vector<1x64xf32>, vector<1x64xf32> -> vector<2x64xf32>
      %c0_26 = arith.constant 0 : index
      %c0_27 = arith.constant 0 : index
      %46 = vector.load %arg6[%c0_26, %c0_27] : memref<2x64xf32, #tpu.memory_space<vmem>>, vector<2x64xf32>
      tpu.vector_store %arg6[%c0_26, %c0_27], %45 {strides = array<i32>} : memref<2x64xf32, #tpu.memory_space<vmem>>, vector<2x64xf32>,
    } else {
    }
    return
  }
  func.func @transform_0(%arg0: i32) -> (i32, i32) {
    %c0_i32 = arith.constant 0 : i32
    %c0_i32_0 = arith.constant 0 : i32
    return %arg0, %c0_i32 : i32, i32
  }
  func.func @transform_1(%arg0: i32) -> (i32, i32) {
    %c0_i32 = arith.constant 0 : i32
    %c0_i32_0 = arith.constant 0 : i32
    %c0_i32_1 = arith.constant 0 : i32
    return %c0_i32, %c0_i32_0 : i32, i32
  }
  func.func @transform_2(%arg0: i32) -> (i32, i32) {
    %c0_i32 = arith.constant 0 : i32
    %c0_i32_0 = arith.constant 0 : i32
    %c0_i32_1 = arith.constant 0 : i32
    return %c0_i32, %c0_i32_0 : i32, i32
  }
  func.func @transform_3(%arg0: i32) -> (i32, i32) {
    %c0_i32 = arith.constant 0 : i32
    %c0_i32_0 = arith.constant 0 : i32
    %c0_i32_1 = arith.constant 0 : i32
    return %c0_i32, %c0_i32_0 : i32, i32
  }
  func.func @transform_4(%arg0: i32) -> (i32, i32) {
    %c0_i32 = arith.constant 0 : i32
    %c0_i32_0 = arith.constant 0 : i32
    return %arg0, %c0_i32 : i32, i32
  }
  func.func @transform_5(%arg0: i32) -> (i32, i32) {
    %c0_i32 = arith.constant 0 : i32
    %c0_i32_0 = arith.constant 0 : i32
    %c0_i32_1 = arith.constant 0 : i32
    return %c0_i32, %c0_i32_0 : i32, i32
  }
}

module attributes {stable_mosaic.version = 11 : i64} {
  func.func @_bn_lrelu_kernel(%arg0: i32, %arg1: memref<338x64xf32, #tpu.memory_space<vmem>>, %arg2: memref<2x64xf32, #tpu.memory_space<vmem>>, %arg3: memref<338x64xbf16, #tpu.memory_space<vmem>>) attributes {dimension_semantics = [#tpu.dimension_semantics<parallel>], iteration_bounds = array<i64: 1>, scalar_prefetch = 0 : i64, scratch_operands = 0 : i64, tpu.core_type = #tpu.core_type<tc>, window_params = [{transform_indices = @transform_0, window_bounds = array<i64: 338, 64>}, {pipeline_mode = #tpu.pipeline_mode<synchronous>, transform_indices = @transform_1, window_bounds = array<i64: 2, 64>}, {transform_indices = @transform_2, window_bounds = array<i64: 338, 64>}]} {
    %c0 = arith.constant 0 : index
    %c0_0 = arith.constant 0 : index
    %0 = vector.load %arg2[%c0, %c0_0] : memref<2x64xf32, #tpu.memory_space<vmem>>, vector<1x64xf32>
    %c1 = arith.constant 1 : index
    %c0_1 = arith.constant 0 : index
    %1 = vector.load %arg2[%c1, %c0_1] : memref<2x64xf32, #tpu.memory_space<vmem>>, vector<1x64xf32>
    %c0_2 = arith.constant 0 : index
    %c0_3 = arith.constant 0 : index
    %2 = vector.load %arg1[%c0_2, %c0_3] : memref<338x64xf32, #tpu.memory_space<vmem>>, vector<338x64xf32>
    %3 = vector.broadcast %0 : vector<1x64xf32> to vector<338x64xf32>
    %4 = arith.mulf %2, %3 : vector<338x64xf32>
    %5 = vector.broadcast %1 : vector<1x64xf32> to vector<338x64xf32>
    %6 = arith.addf %4, %5 : vector<338x64xf32>
    %cst = arith.constant 2.000000e-01 : f32
    %7 = vector.broadcast %cst : f32 to vector<338x64xf32>
    %8 = arith.mulf %7, %6 : vector<338x64xf32>
    %9 = arith.maximumf %6, %8 : vector<338x64xf32>
    %10 = arith.truncf %9 : vector<338x64xf32> to vector<338x64xbf16>
    %c0_4 = arith.constant 0 : index
    %c0_5 = arith.constant 0 : index
    %11 = vector.load %arg3[%c0_4, %c0_5] : memref<338x64xbf16, #tpu.memory_space<vmem>>, vector<338x64xbf16>
    tpu.vector_store %arg3[%c0_4, %c0_5], %10 {strides = array<i32>} : memref<338x64xbf16, #tpu.memory_space<vmem>>, vector<338x64xbf16>,
    return
  }
  func.func @transform_0(%arg0: i32) -> (i32, i32) {
    %c0_i32 = arith.constant 0 : i32
    %c0_i32_0 = arith.constant 0 : i32
    return %arg0, %c0_i32 : i32, i32
  }
  func.func @transform_1(%arg0: i32) -> (i32, i32) {
    %c0_i32 = arith.constant 0 : i32
    %c0_i32_0 = arith.constant 0 : i32
    %c0_i32_1 = arith.constant 0 : i32
    return %c0_i32, %c0_i32_0 : i32, i32
  }
  func.func @transform_2(%arg0: i32) -> (i32, i32) {
    %c0_i32 = arith.constant 0 : i32
    %c0_i32_0 = arith.constant 0 : i32
    return %arg0, %c0_i32 : i32, i32
  }
}

module attributes {stable_mosaic.version = 11 : i64} {
  func.func @_matmul_stats_kernel(%arg0: i32, %arg1: memref<50x1024xbf16, #tpu.memory_space<vmem>>, %arg2: memref<1024x128xbf16, #tpu.memory_space<vmem>>, %arg3: memref<1x128xf32, #tpu.memory_space<vmem>>, %arg4: memref<1x128xf32, #tpu.memory_space<vmem>>, %arg5: memref<50x128xf32, #tpu.memory_space<vmem>>, %arg6: memref<2x128xf32, #tpu.memory_space<vmem>>) attributes {dimension_semantics = [#tpu.dimension_semantics<arbitrary>], iteration_bounds = array<i64: 1>, scalar_prefetch = 0 : i64, scratch_operands = 0 : i64, tpu.core_type = #tpu.core_type<tc>, window_params = [{transform_indices = @transform_0, window_bounds = array<i64: 50, 1024>}, {pipeline_mode = #tpu.pipeline_mode<synchronous>, transform_indices = @transform_1, window_bounds = array<i64: 1024, 128>}, {pipeline_mode = #tpu.pipeline_mode<synchronous>, transform_indices = @transform_2, window_bounds = array<i64: 1, 128>}, {pipeline_mode = #tpu.pipeline_mode<synchronous>, transform_indices = @transform_3, window_bounds = array<i64: 1, 128>}, {transform_indices = @transform_4, window_bounds = array<i64: 50, 128>}, {pipeline_mode = #tpu.pipeline_mode<synchronous>, transform_indices = @transform_5, window_bounds = array<i64: 2, 128>}]} {
    %c0_i32 = arith.constant 0 : i32
    %0 = arith.cmpi eq, %arg0, %c0_i32 : i32
    %1 = arith.extui %0 : i1 to i32
    %c0_i32_0 = arith.constant 0 : i32
    %2 = arith.cmpi ne, %1, %c0_i32_0 : i32
    scf.if %2 {
      %cst_16 = arith.constant 0.000000e+00 : f32
      %29 = vector.broadcast %cst_16 : f32 to vector<2x128xf32>
      %c0_17 = arith.constant 0 : index
      %c0_18 = arith.constant 0 : index
      %30 = vector.load %arg6[%c0_17, %c0_18] : memref<2x128xf32, #tpu.memory_space<vmem>>, vector<2x128xf32>
      tpu.vector_store %arg6[%c0_17, %c0_18], %29 {strides = array<i32>} : memref<2x128xf32, #tpu.memory_space<vmem>>, vector<2x128xf32>,
    } else {
    }
    %c0 = arith.constant 0 : index
    %c0_1 = arith.constant 0 : index
    %3 = vector.load %arg1[%c0, %c0_1] : memref<50x1024xbf16, #tpu.memory_space<vmem>>, vector<50x1024xbf16>
    %c0_2 = arith.constant 0 : index
    %c0_3 = arith.constant 0 : index
    %4 = vector.load %arg2[%c0_2, %c0_3] : memref<1024x128xbf16, #tpu.memory_space<vmem>>, vector<1024x128xbf16>
    %cst = arith.constant dense<0.000000e+00> : vector<50x128xf32>
    %5 = tpu.matmul %3, %4, %cst {dimension_numbers = #tpu.dot_dimension_numbers<[1], [0], [0], [1], [0, 0, 1, 1], [], []>} : vector<50x1024xbf16>, vector<1024x128xbf16>, vector<50x128xf32> -> vector<50x128xf32>
    %c0_4 = arith.constant 0 : index
    %c0_5 = arith.constant 0 : index
    %6 = vector.load %arg5[%c0_4, %c0_5] : memref<50x128xf32, #tpu.memory_space<vmem>>, vector<50x128xf32>
    tpu.vector_store %arg5[%c0_4, %c0_5], %5 {strides = array<i32>} : memref<50x128xf32, #tpu.memory_space<vmem>>, vector<50x128xf32>,
    %c50_i32 = arith.constant 50 : i32
    %7 = arith.muli %arg0, %c50_i32 : i32
    %8 = tpu.iota {dimensions = array<i32: 0>} : vector<50x1xi32>
    %9 = vector.broadcast %7 : i32 to vector<50x1xi32>
    %10 = arith.addi %9, %8 : vector<50x1xi32>
    %c50_i32_6 = arith.constant 50 : i32
    %11 = vector.broadcast %c50_i32_6 : i32 to vector<50x1xi32>
    %12 = arith.cmpi slt, %10, %11 : vector<50x1xi32>
    %cst_7 = arith.constant 0.000000e+00 : f32
    %13 = vector.shape_cast %12 : vector<50x1xi1> to vector<50x1xi1>
    %14 = vector.broadcast %13 : vector<50x1xi1> to vector<50x128xi1>
    %15 = vector.broadcast %cst_7 : f32 to vector<50x128xf32>
    %16 = arith.select %14, %5, %15 : vector<50x128xi1>, vector<50x128xf32>
    %cst_8 = arith.constant dense<0.000000e+00> : vector<128xf32>
    %17 = vector.multi_reduction <add>, %16, %cst_8 [0] : vector<50x128xf32> to vector<128xf32>
    %18 = vector.shape_cast %17 : vector<128xf32> to vector<1x128xf32>
    %19 = arith.mulf %16, %16 : vector<50x128xf32>
    %cst_9 = arith.constant dense<0.000000e+00> : vector<128xf32>
    %20 = vector.multi_reduction <add>, %19, %cst_9 [0] : vector<50x128xf32> to vector<128xf32>
    %21 = vector.shape_cast %20 : vector<128xf32> to vector<1x128xf32>
    %22 = tpu.concatenate %18, %21 in 0 : vector<1x128xf32>, vector<1x128xf32> -> vector<2x128xf32>
    %c0_10 = arith.constant 0 : index
    %c0_11 = arith.constant 0 : index
    %23 = vector.load %arg6[%c0_10, %c0_11] : memref<2x128xf32, #tpu.memory_space<vmem>>, vector<2x128xf32>
    %24 = arith.addf %23, %22 : vector<2x128xf32>
    %c0_12 = arith.constant 0 : index
    %c0_13 = arith.constant 0 : index
    %25 = vector.load %arg6[%c0_12, %c0_13] : memref<2x128xf32, #tpu.memory_space<vmem>>, vector<2x128xf32>
    tpu.vector_store %arg6[%c0_12, %c0_13], %24 {strides = array<i32>} : memref<2x128xf32, #tpu.memory_space<vmem>>, vector<2x128xf32>,
    %c0_i32_14 = arith.constant 0 : i32
    %26 = arith.cmpi eq, %arg0, %c0_i32_14 : i32
    %27 = arith.extui %26 : i1 to i32
    %c0_i32_15 = arith.constant 0 : i32
    %28 = arith.cmpi ne, %27, %c0_i32_15 : i32
    scf.if %28 {
      %c0_16 = arith.constant 0 : index
      %c0_17 = arith.constant 0 : index
      %29 = vector.load %arg6[%c0_16, %c0_17] : memref<2x128xf32, #tpu.memory_space<vmem>>, vector<1x128xf32>
      %cst_18 = arith.constant 2.000000e-02 : f32
      %30 = vector.broadcast %cst_18 : f32 to vector<1x128xf32>
      %31 = arith.mulf %29, %30 : vector<1x128xf32>
      %c1 = arith.constant 1 : index
      %c0_19 = arith.constant 0 : index
      %32 = vector.load %arg6[%c1, %c0_19] : memref<2x128xf32, #tpu.memory_space<vmem>>, vector<1x128xf32>
      %cst_20 = arith.constant 2.000000e-02 : f32
      %33 = vector.broadcast %cst_20 : f32 to vector<1x128xf32>
      %34 = arith.mulf %32, %33 : vector<1x128xf32>
      %35 = arith.mulf %31, %31 : vector<1x128xf32>
      %36 = arith.subf %34, %35 : vector<1x128xf32>
      %c0_21 = arith.constant 0 : index
      %c0_22 = arith.constant 0 : index
      %37 = vector.load %arg3[%c0_21, %c0_22] : memref<1x128xf32, #tpu.memory_space<vmem>>, vector<1x128xf32>
      %cst_23 = arith.constant 9.99999974E-6 : f32
      %38 = vector.broadcast %cst_23 : f32 to vector<1x128xf32>
      %39 = arith.addf %36, %38 : vector<1x128xf32>
      %40 = math.rsqrt %39 : vector<1x128xf32>
      %41 = arith.mulf %37, %40 : vector<1x128xf32>
      %c0_24 = arith.constant 0 : index
      %c0_25 = arith.constant 0 : index
      %42 = vector.load %arg4[%c0_24, %c0_25] : memref<1x128xf32, #tpu.memory_space<vmem>>, vector<1x128xf32>
      %43 = arith.mulf %31, %41 : vector<1x128xf32>
      %44 = arith.subf %42, %43 : vector<1x128xf32>
      %45 = tpu.concatenate %41, %44 in 0 : vector<1x128xf32>, vector<1x128xf32> -> vector<2x128xf32>
      %c0_26 = arith.constant 0 : index
      %c0_27 = arith.constant 0 : index
      %46 = vector.load %arg6[%c0_26, %c0_27] : memref<2x128xf32, #tpu.memory_space<vmem>>, vector<2x128xf32>
      tpu.vector_store %arg6[%c0_26, %c0_27], %45 {strides = array<i32>} : memref<2x128xf32, #tpu.memory_space<vmem>>, vector<2x128xf32>,
    } else {
    }
    return
  }
  func.func @transform_0(%arg0: i32) -> (i32, i32) {
    %c0_i32 = arith.constant 0 : i32
    %c0_i32_0 = arith.constant 0 : i32
    return %arg0, %c0_i32 : i32, i32
  }
  func.func @transform_1(%arg0: i32) -> (i32, i32) {
    %c0_i32 = arith.constant 0 : i32
    %c0_i32_0 = arith.constant 0 : i32
    %c0_i32_1 = arith.constant 0 : i32
    return %c0_i32, %c0_i32_0 : i32, i32
  }
  func.func @transform_2(%arg0: i32) -> (i32, i32) {
    %c0_i32 = arith.constant 0 : i32
    %c0_i32_0 = arith.constant 0 : i32
    %c0_i32_1 = arith.constant 0 : i32
    return %c0_i32, %c0_i32_0 : i32, i32
  }
  func.func @transform_3(%arg0: i32) -> (i32, i32) {
    %c0_i32 = arith.constant 0 : i32
    %c0_i32_0 = arith.constant 0 : i32
    %c0_i32_1 = arith.constant 0 : i32
    return %c0_i32, %c0_i32_0 : i32, i32
  }
  func.func @transform_4(%arg0: i32) -> (i32, i32) {
    %c0_i32 = arith.constant 0 : i32
    %c0_i32_0 = arith.constant 0 : i32
    return %arg0, %c0_i32 : i32, i32
  }
  func.func @transform_5(%arg0: i32) -> (i32, i32) {
    %c0_i32 = arith.constant 0 : i32
    %c0_i32_0 = arith.constant 0 : i32
    %c0_i32_1 = arith.constant 0 : i32
    return %c0_i32, %c0_i32_0 : i32, i32
  }
}

module attributes {stable_mosaic.version = 11 : i64} {
  func.func @_bn_lrelu_final_kernel(%arg0: i32, %arg1: memref<2x25x128xf32, #tpu.memory_space<vmem>>, %arg2: memref<2x128xf32, #tpu.memory_space<vmem>>, %arg3: memref<25x128xf32, #tpu.memory_space<vmem>>, %arg4: memref<1x1xf32, #tpu.memory_space<smem>>, %arg5: memref<2x1xf32, #tpu.memory_space<vmem>>) attributes {dimension_semantics = [#tpu.dimension_semantics<parallel>], iteration_bounds = array<i64: 1>, scalar_prefetch = 0 : i64, scratch_operands = 0 : i64, tpu.core_type = #tpu.core_type<tc>, window_params = [{transform_indices = @transform_0, window_bounds = array<i64: 2, 25, 128>}, {pipeline_mode = #tpu.pipeline_mode<synchronous>, transform_indices = @transform_1, window_bounds = array<i64: 2, 128>}, {pipeline_mode = #tpu.pipeline_mode<synchronous>, transform_indices = @transform_2, window_bounds = array<i64: 25, 128>}, {transform_indices = @transform_3, window_bounds = array<i64: 1, 1>}, {transform_indices = @transform_4, window_bounds = array<i64: 2, 1>}]} {
    %c0 = arith.constant 0 : index
    %c0_0 = arith.constant 0 : index
    %0 = vector.load %arg2[%c0, %c0_0] : memref<2x128xf32, #tpu.memory_space<vmem>>, vector<1x128xf32>
    %1 = vector.shape_cast %0 : vector<1x128xf32> to vector<1x1x128xf32>
    %c1 = arith.constant 1 : index
    %c0_1 = arith.constant 0 : index
    %2 = vector.load %arg2[%c1, %c0_1] : memref<2x128xf32, #tpu.memory_space<vmem>>, vector<1x128xf32>
    %3 = vector.shape_cast %2 : vector<1x128xf32> to vector<1x1x128xf32>
    %c0_2 = arith.constant 0 : index
    %c0_3 = arith.constant 0 : index
    %c0_4 = arith.constant 0 : index
    %4 = vector.load %arg1[%c0_2, %c0_3, %c0_4] : memref<2x25x128xf32, #tpu.memory_space<vmem>>, vector<2x25x128xf32>
    %5 = vector.broadcast %1 : vector<1x1x128xf32> to vector<2x25x128xf32>
    %6 = arith.mulf %4, %5 : vector<2x25x128xf32>
    %7 = vector.broadcast %3 : vector<1x1x128xf32> to vector<2x25x128xf32>
    %8 = arith.addf %6, %7 : vector<2x25x128xf32>
    %cst = arith.constant 2.000000e-01 : f32
    %9 = vector.broadcast %cst : f32 to vector<2x25x128xf32>
    %10 = arith.mulf %9, %8 : vector<2x25x128xf32>
    %11 = arith.maximumf %8, %10 : vector<2x25x128xf32>
    %c0_5 = arith.constant 0 : index
    %c0_6 = arith.constant 0 : index
    %12 = vector.load %arg3[%c0_5, %c0_6] : memref<25x128xf32, #tpu.memory_space<vmem>>, vector<25x128xf32>
    %13 = vector.shape_cast %12 : vector<25x128xf32> to vector<1x25x128xf32>
    %14 = vector.broadcast %13 : vector<1x25x128xf32> to vector<2x25x128xf32>
    %15 = arith.mulf %11, %14 : vector<2x25x128xf32>
    %cst_7 = arith.constant dense<0.000000e+00> : vector<2x25xf32>
    %16 = vector.multi_reduction <add>, %15, %cst_7 [2] : vector<2x25x128xf32> to vector<2x25xf32>
    %17 = vector.shape_cast %16 : vector<2x25xf32> to vector<2x25x1xf32>
    %cst_8 = arith.constant dense<0.000000e+00> : vector<2x1xf32>
    %18 = vector.multi_reduction <add>, %17, %cst_8 [1] : vector<2x25x1xf32> to vector<2x1xf32>
    %c0_9 = arith.constant 0 : index
    %c0_10 = arith.constant 0 : index
    %19 = memref.load %arg4[%c0_9, %c0_10] : memref<1x1xf32, #tpu.memory_space<smem>>
    %20 = vector.broadcast %19 : f32 to vector<2x1xf32>
    %21 = arith.addf %18, %20 : vector<2x1xf32>
    %c0_11 = arith.constant 0 : index
    %c0_12 = arith.constant 0 : index
    %22 = vector.load %arg5[%c0_11, %c0_12] : memref<2x1xf32, #tpu.memory_space<vmem>>, vector<2x1xf32>
    tpu.vector_store %arg5[%c0_11, %c0_12], %21 {strides = array<i32>} : memref<2x1xf32, #tpu.memory_space<vmem>>, vector<2x1xf32>,
    return
  }
  func.func @transform_0(%arg0: i32) -> (i32, i32, i32) {
    %c0_i32 = arith.constant 0 : i32
    %c0_i32_0 = arith.constant 0 : i32
    %c0_i32_1 = arith.constant 0 : i32
    return %arg0, %c0_i32, %c0_i32_0 : i32, i32, i32
  }
  func.func @transform_1(%arg0: i32) -> (i32, i32) {
    %c0_i32 = arith.constant 0 : i32
    %c0_i32_0 = arith.constant 0 : i32
    %c0_i32_1 = arith.constant 0 : i32
    return %c0_i32, %c0_i32_0 : i32, i32
  }
  func.func @transform_2(%arg0: i32) -> (i32, i32) {
    %c0_i32 = arith.constant 0 : i32
    %c0_i32_0 = arith.constant 0 : i32
    %c0_i32_1 = arith.constant 0 : i32
    return %c0_i32, %c0_i32_0 : i32, i32
  }
  func.func @transform_3(%arg0: i32) -> (i32, i32) {
    %c0_i32 = arith.constant 0 : i32
    %c0_i32_0 = arith.constant 0 : i32
    %c0_i32_1 = arith.constant 0 : i32
    return %c0_i32, %c0_i32_0 : i32, i32
  }
  func.func @transform_4(%arg0: i32) -> (i32, i32) {
    %c0_i32 = arith.constant 0 : i32
    %c0_i32_0 = arith.constant 0 : i32
    return %arg0, %c0_i32 : i32, i32
  }
}

</mosaic_0001>

<bundles_post_ra>
// kernel: discriminator_forward.5
= control target key start
LH: loop header
LB: loop body
LE: loop exit
PB: predicated region body
PF: predicated region fallthrough
CT: control target
= control target key end

     0   :  { %vm409_vm0 = vcmask 519168   ;;  %vm452_vm1 = vcmask 516096   ;;  %s957_s0 = inlined_call_operand.vmem [shape: f32[338,64], index: 0, kind: input, shape index: {}]   ;;  %s958_s1 = inlined_call_operand.vmem [shape: f32[2,64], index: 1, kind: input, shape index: {}]   ;;  %s959_s2 = inlined_call_operand.vmem [shape: bf16[338,64], index: 2, kind: output, shape index: {}]  }
   0x1   :  { %v564_v0 = vld [vmem:[%s958_s1] ss:$0 sm:$0xff]  ;;  %v569_v1 = vld [vmem:[%s958_s1 + $0x1] ss:$0 sm:$0xff]  ;;  %v14_v4 = vld [vmem:[%s957_s0 + $0x8] sm:$0xff] }
   0x2   :  { %v13_v2 = vld [vmem:[%s957_s0] sm:$0xff]  ;;  %v15_v5 = vld [vmem:[%s957_s0 + $0x10] sm:$0xff]  ;;  %v16_v6 = vld [vmem:[%s957_s0 + $0x18] sm:$0xff]  ;;  %v61_v7 = vmul.f32 %v564_v0, %v14_v4 }
   0x3   :  { %v60_v3 = vmul.f32 %v564_v0, %v13_v2  ;;  %v62_v8 = vmul.f32 %v564_v0, %v15_v5  ;;  %v63_v9 = vmul.f32 %v564_v0, %v16_v6  ;;  %v17_v10 = vld [vmem:[%s957_s0 + $0x20] sm:$0xff]  ;;  %v18_v11 = vld [vmem:[%s957_s0 + $0x28] sm:$0xff]  ;;  %v19_v12 = vld [vmem:[%s957_s0 + $0x30] sm:$0xff] }
   0x4   :  { %v64_v14 = vmul.f32 %v564_v0, %v17_v10  ;;  %v65_v15 = vmul.f32 %v564_v0, %v18_v11  ;;  %v66_v16 = vmul.f32 %v564_v0, %v19_v12  ;;  %v20_v17 = vld [vmem:[%s957_s0 + $0x38] sm:$0xff]  ;;  %v108_v18 = vadd.f32 %v569_v1, %v61_v7  ;;  %v21_v38 = vld [vmem:[%s957_s0 + $0x40] sm:$0xff]  ;;  %v22_v43 = vld [vmem:[%s957_s0 + $0x48] sm:$0xff] }
   0x5   :  { %v107_v13 = vadd.f32 %v569_v1, %v60_v3  ;;  %v109_v19 = vadd.f32 %v569_v1, %v62_v8  ;;  %v110_v20 = vadd.f32 %v569_v1, %v63_v9  ;;  %v67_v21 = vmul.f32 %v564_v0, %v20_v17  ;;  %v23_v44 = vld [vmem:[%s957_s0 + $0x50] sm:$0xff]  ;;  %v24_v45 = vld [vmem:[%s957_s0 + $0x58] sm:$0xff]  ;;  %v25_v50 = vld [vmem:[%s957_s0 + $0x60] sm:$0xff] }
   0x6   :  { %v111_v23 = vadd.f32 %v569_v1, %v64_v14  ;;  %v112_v24 = vadd.f32 %v569_v1, %v65_v15  ;;  %v113_v25 = vadd.f32 %v569_v1, %v66_v16  ;;  %v151_v26 = vmul.f32 0.2, %v108_v18  ;;  %v26_v51 = vld [vmem:[%s957_s0 + $0x68] sm:$0xff]  ;;  %v27_v52 = vld [vmem:[%s957_s0 + $0x70] sm:$0xff]  ;;  %v28_v57 = vld [vmem:[%s957_s0 + $0x78] sm:$0xff] }
   0x7   :  { %v150_v22 = vmul.f32 0.2, %v107_v13  ;;  %v152_v27 = vmul.f32 0.2, %v109_v19  ;;  %v153_v28 = vmul.f32 0.2, %v110_v20  ;;  %v114_v29 = vadd.f32 %v569_v1, %v67_v21 }
   0x8   :  { %v154_v31 = vmul.f32 0.2, %v111_v23  ;;  %v155_v32 = vmul.f32 0.2, %v112_v24  ;;  %v156_v33 = vmul.f32 0.2, %v113_v25  ;;  %v194_v34 = vmax.f32 %v108_v18, %v151_v26 }
   0x9   :  { %v193_v30 = vmax.f32 %v107_v13, %v150_v22  ;;  %v195_v35 = vmax.f32 %v109_v19, %v152_v27  ;;  %v196_v36 = vmax.f32 %v110_v20, %v153_v28  ;;  %v157_v37 = vmul.f32 0.2, %v114_v29 }
   0xa   :  { %v197_v40 = vmax.f32 %v111_v23, %v154_v31  ;;  %v198_v41 = vmax.f32 %v112_v24, %v155_v32  ;;  %v199_v42 = vmax.f32 %v113_v25, %v156_v33  ;;  %v504_v46 = vpack.c.bf16 %v194_v34, %v194_v34  ;;  %v29_v24 = vld [vmem:[%s957_s0 + $0x80] sm:$0xff]  ;;  %v32_v31 = vld [vmem:[%s957_s0 + $0x98] sm:$0xff] }
   0xb   :  { %v503_v39 = vpack.c.bf16 %v193_v30, %v193_v30  ;;  %v505_v47 = vpack.c.bf16 %v195_v35, %v195_v35  ;;  %v506_v48 = vpack.c.bf16 %v196_v36, %v196_v36  ;;  %v200_v49 = vmax.f32 %v114_v29, %v157_v37  ;;  %v30_v29 = vld [vmem:[%s957_s0 + $0x88] sm:$0xff]  ;;  %v31_v30 = vld [vmem:[%s957_s0 + $0x90] sm:$0xff]  ;;  %v33_v36 = vld [vmem:[%s957_s0 + $0xa0] sm:$0xff] }
   0xc   :  { %v507_v53 = vpack.c.bf16 %v197_v40, %v197_v40  ;;  %v508_v54 = vpack.c.bf16 %v198_v41, %v198_v41  ;;  %v509_v55 = vpack.c.bf16 %v199_v42, %v199_v42  ;;  %v68_v56 = vmul.f32 %v564_v0, %v21_v38  ;;  %411 = vst.msk [vmem:[%s959_s2 + $0x4] sm:$0xf] %vm409_vm0, %v504_v46  ;;  %v34_v37 = vld [vmem:[%s957_s0 + $0xa8] sm:$0xff]  ;;  %v35_v38 = vld [vmem:[%s957_s0 + $0xb0] sm:$0xff] }
   0xd   :  { %410 = vst.msk [vmem:[%s959_s2] sm:$0xf] %vm409_vm0, %v503_v39  ;;  %412 = vst.msk [vmem:[%s959_s2 + $0x8] sm:$0xf] %vm409_vm0, %v505_v47  ;;  %v510_v58 = vpack.c.bf16 %v200_v49, %v200_v49  ;;  %v69_v59 = vmul.f32 %v564_v0, %v22_v43  ;;  %v70_v60 = vmul.f32 %v564_v0, %v23_v44  ;;  %v36_v43 = vld [vmem:[%s957_s0 + $0xb8] sm:$0xff] }
   0xe   :  { %413 = vst.msk [vmem:[%s959_s2 + $0xc] sm:$0xf] %vm409_vm0, %v506_v48  ;;  %v71_v61 = vmul.f32 %v564_v0, %v24_v45  ;;  %414 = vst.msk [vmem:[%s959_s2 + $0x10] sm:$0xf] %vm409_vm0, %v507_v53  ;;  %v115_v62 = vadd.f32 %v569_v1, %v68_v56  ;;  %v72_v63 = vmul.f32 %v564_v0, %v25_v50 }
   0xf   :  { %415 = vst.msk [vmem:[%s959_s2 + $0x14] sm:$0xf] %vm409_vm0, %v508_v54  ;;  %416 = vst.msk [vmem:[%s959_s2 + $0x18] sm:$0xf] %vm409_vm0, %v509_v55  ;;  %v73_v2 = vmul.f32 %v564_v0, %v26_v51  ;;  %v74_v3 = vmul.f32 %v564_v0, %v27_v52  ;;  %v116_v4 = vadd.f32 %v569_v1, %v69_v59 }
  0x10   :  { %417 = vst.msk [vmem:[%s959_s2 + $0x1c] sm:$0xf] %vm409_vm0, %v510_v58  ;;  %v117_v5 = vadd.f32 %v569_v1, %v70_v60  ;;  %v118_v6 = vadd.f32 %v569_v1, %v71_v61  ;;  %v75_v7 = vmul.f32 %v564_v0, %v28_v57  ;;  %v158_v8 = vmul.f32 0.2, %v115_v62 }
  0x11   :  { %v119_v9 = vadd.f32 %v569_v1, %v72_v63  ;;  %v120_v10 = vadd.f32 %v569_v1, %v73_v2  ;;  %v121_v11 = vadd.f32 %v569_v1, %v74_v3  ;;  %v159_v12 = vmul.f32 0.2, %v116_v4 }
  0x12   :  { %v160_v13 = vmul.f32 0.2, %v117_v5  ;;  %v161_v14 = vmul.f32 0.2, %v118_v6  ;;  %v122_v15 = vadd.f32 %v569_v1, %v75_v7  ;;  %v201_v16 = vmax.f32 %v115_v62, %v158_v8 }
  0x13   :  { %v162_v17 = vmul.f32 0.2, %v119_v9  ;;  %v163_v18 = vmul.f32 0.2, %v120_v10  ;;  %v164_v19 = vmul.f32 0.2, %v121_v11  ;;  %v202_v20 = vmax.f32 %v116_v4, %v159_v12 }
  0x14   :  { %v203_v21 = vmax.f32 %v117_v5, %v160_v13  ;;  %v204_v22 = vmax.f32 %v118_v6, %v161_v14  ;;  %v165_v23 = vmul.f32 0.2, %v122_v15  ;;  %v511_v25 = vpack.c.bf16 %v201_v16, %v201_v16  ;;  %v39_v16 = vld [vmem:[%s957_s0 + $0xd0] sm:$0xff] }
  0x15   :  { %v205_v26 = vmax.f32 %v119_v9, %v162_v17  ;;  %v206_v27 = vmax.f32 %v120_v10, %v163_v18  ;;  %v207_v28 = vmax.f32 %v121_v11, %v164_v19  ;;  %v512_v32 = vpack.c.bf16 %v202_v20, %v202_v20  ;;  %v37_v10 = vld [vmem:[%s957_s0 + $0xc0] sm:$0xff]  ;;  %v40_v17 = vld [vmem:[%s957_s0 + $0xd8] sm:$0xff] }
  0x16   :  { %v513_v33 = vpack.c.bf16 %v203_v21, %v203_v21  ;;  %v514_v34 = vpack.c.bf16 %v204_v22, %v204_v22  ;;  %v208_v35 = vmax.f32 %v122_v15, %v165_v23  ;;  %418 = vst.msk [vmem:[%s959_s2 + $0x20] sm:$0xf] %vm409_vm0, %v511_v25  ;;  %v76_v42 = vmul.f32 %v564_v0, %v29_v24  ;;  %v38_v15 = vld [vmem:[%s957_s0 + $0xc8] sm:$0xff]  ;;  %v41_v22 = vld [vmem:[%s957_s0 + $0xe0] sm:$0xff]  ;;  %v43_v24 = vld [vmem:[%s957_s0 + $0xf0] sm:$0xff] }
  0x17   :  { %v515_v39 = vpack.c.bf16 %v205_v26, %v205_v26  ;;  %v516_v40 = vpack.c.bf16 %v206_v27, %v206_v27  ;;  %v517_v41 = vpack.c.bf16 %v207_v28, %v207_v28  ;;  %419 = vst.msk [vmem:[%s959_s2 + $0x24] sm:$0xf] %vm409_vm0, %v512_v32  ;;  %v77_v45 = vmul.f32 %v564_v0, %v30_v29  ;;  %v42_v23 = vld [vmem:[%s957_s0 + $0xe8] sm:$0xff]  ;;  %v44_v29 = vld [vmem:[%s957_s0 + $0xf8] sm:$0xff] }
  0x18   :  { %420 = vst.msk [vmem:[%s959_s2 + $0x28] sm:$0xf] %vm409_vm0, %v513_v33  ;;  %421 = vst.msk [vmem:[%s959_s2 + $0x2c] sm:$0xf] %vm409_vm0, %v514_v34  ;;  %v518_v44 = vpack.c.bf16 %v208_v35, %v208_v35  ;;  %v78_v46 = vmul.f32 %v564_v0, %v31_v30  ;;  %v79_v47 = vmul.f32 %v564_v0, %v32_v31 }
  0x19   :  { %422 = vst.msk [vmem:[%s959_s2 + $0x30] sm:$0xf] %vm409_vm0, %v515_v39  ;;  %423 = vst.msk [vmem:[%s959_s2 + $0x34] sm:$0xf] %vm409_vm0, %v516_v40  ;;  %v123_v48 = vadd.f32 %v569_v1, %v76_v42  ;;  %v80_v49 = vmul.f32 %v564_v0, %v33_v36  ;;  %v81_v50 = vmul.f32 %v564_v0, %v34_v37 }
  0x1a   :  { %424 = vst.msk [vmem:[%s959_s2 + $0x38] sm:$0xf] %vm409_vm0, %v517_v41  ;;  %v82_v51 = vmul.f32 %v564_v0, %v35_v38  ;;  %425 = vst.msk [vmem:[%s959_s2 + $0x3c] sm:$0xf] %vm409_vm0, %v518_v44  ;;  %v124_v52 = vadd.f32 %v569_v1, %v77_v45  ;;  %v125_v53 = vadd.f32 %v569_v1, %v78_v46 }
  0x1b   :  { %v126_v54 = vadd.f32 %v569_v1, %v79_v47  ;;  %v83_v55 = vmul.f32 %v564_v0, %v36_v43  ;;  %v166_v56 = vmul.f32 0.2, %v123_v48  ;;  %v127_v57 = vadd.f32 %v569_v1, %v80_v49 }
  0x1c   :  { %v128_v58 = vadd.f32 %v569_v1, %v81_v50  ;;  %v129_v59 = vadd.f32 %v569_v1, %v82_v51  ;;  %v167_v60 = vmul.f32 0.2, %v124_v52  ;;  %v168_v61 = vmul.f32 0.2, %v125_v53 }
  0x1d   :  { %v169_v62 = vmul.f32 0.2, %v126_v54  ;;  %v130_v63 = vadd.f32 %v569_v1, %v83_v55  ;;  %v209_v2 = vmax.f32 %v123_v48, %v166_v56  ;;  %v170_v3 = vmul.f32 0.2, %v127_v57 }
  0x1e   :  { %v171_v4 = vmul.f32 0.2, %v128_v58  ;;  %v172_v5 = vmul.f32 0.2, %v129_v59  ;;  %v210_v6 = vmax.f32 %v124_v52, %v167_v60  ;;  %v211_v7 = vmax.f32 %v125_v53, %v168_v61 }
  0x1f   :  { %v212_v8 = vmax.f32 %v126_v54, %v169_v62  ;;  %v173_v9 = vmul.f32 0.2, %v130_v63  ;;  %v519_v11 = vpack.c.bf16 %v209_v2, %v209_v2  ;;  %v213_v12 = vmax.f32 %v127_v57, %v170_v3  ;;  %v47_v2 = vld [vmem:[%s957_s0 + $0x110] sm:$0xff]  ;;  %v48_v3 = vld [vmem:[%s957_s0 + $0x118] sm:$0xff] }
  0x20   :  { %v214_v13 = vmax.f32 %v128_v58, %v171_v4  ;;  %v215_v14 = vmax.f32 %v129_v59, %v172_v5  ;;  %v520_v18 = vpack.c.bf16 %v210_v6, %v210_v6  ;;  %v521_v19 = vpack.c.bf16 %v211_v7, %v211_v7  ;;  %v45_v58 = vld [vmem:[%s957_s0 + $0x100] sm:$0xff] }
  0x21   :  { %v522_v20 = vpack.c.bf16 %v212_v8, %v212_v8  ;;  %v216_v21 = vmax.f32 %v130_v63, %v173_v9  ;;  %426 = vst.msk [vmem:[%s959_s2 + $0x40] sm:$0xf] %vm409_vm0, %v519_v11  ;;  %v523_v25 = vpack.c.bf16 %v213_v12, %v213_v12  ;;  %v84_v28 = vmul.f32 %v564_v0, %v37_v10  ;;  %v46_v63 = vld [vmem:[%s957_s0 + $0x108] sm:$0xff]  ;;  %v49_v8 = vld [vmem:[%s957_s0 + $0x120] sm:$0xff]  ;;  %v51_v10 = vld [vmem:[%s957_s0 + $0x130] sm:$0xff] }
  0x22   :  { %v524_v26 = vpack.c.bf16 %v214_v13, %v214_v13  ;;  %v525_v27 = vpack.c.bf16 %v215_v14, %v215_v14  ;;  %427 = vst.msk [vmem:[%s959_s2 + $0x44] sm:$0xf] %vm409_vm0, %v520_v18  ;;  %428 = vst.msk [vmem:[%s959_s2 + $0x48] sm:$0xf] %vm409_vm0, %v521_v19  ;;  %v85_v31 = vmul.f32 %v564_v0, %v38_v15  ;;  %v50_v9 = vld [vmem:[%s957_s0 + $0x128] sm:$0xff]  ;;  %v52_v15 = vld [vmem:[%s957_s0 + $0x138] sm:$0xff] }
  0x23   :  { %429 = vst.msk [vmem:[%s959_s2 + $0x4c] sm:$0xf] %vm409_vm0, %v522_v20  ;;  %v526_v30 = vpack.c.bf16 %v216_v21, %v216_v21  ;;  %v86_v32 = vmul.f32 %v564_v0, %v39_v16  ;;  %v87_v33 = vmul.f32 %v564_v0, %v40_v17  ;;  %430 = vst.msk [vmem:[%s959_s2 + $0x50] sm:$0xf] %vm409_vm0, %v523_v25 }
  0x24   :  { %431 = vst.msk [vmem:[%s959_s2 + $0x54] sm:$0xf] %vm409_vm0, %v524_v26  ;;  %432 = vst.msk [vmem:[%s959_s2 + $0x58] sm:$0xf] %vm409_vm0, %v525_v27  ;;  %v131_v34 = vadd.f32 %v569_v1, %v84_v28  ;;  %v88_v35 = vmul.f32 %v564_v0, %v41_v22  ;;  %v89_v36 = vmul.f32 %v564_v0, %v42_v23 }
  0x25   :  { %v90_v37 = vmul.f32 %v564_v0, %v43_v24  ;;  %433 = vst.msk [vmem:[%s959_s2 + $0x5c] sm:$0xf] %vm409_vm0, %v526_v30  ;;  %v132_v38 = vadd.f32 %v569_v1, %v85_v31  ;;  %v133_v39 = vadd.f32 %v569_v1, %v86_v32  ;;  %v134_v40 = vadd.f32 %v569_v1, %v87_v33 }
  0x26   :  { %v91_v41 = vmul.f32 %v564_v0, %v44_v29  ;;  %v174_v42 = vmul.f32 0.2, %v131_v34  ;;  %v135_v43 = vadd.f32 %v569_v1, %v88_v35  ;;  %v136_v44 = vadd.f32 %v569_v1, %v89_v36 }
  0x27   :  { %v137_v45 = vadd.f32 %v569_v1, %v90_v37  ;;  %v175_v46 = vmul.f32 0.2, %v132_v38  ;;  %v176_v47 = vmul.f32 0.2, %v133_v39  ;;  %v177_v48 = vmul.f32 0.2, %v134_v40 }
  0x28   :  { %v138_v49 = vadd.f32 %v569_v1, %v91_v41  ;;  %v217_v50 = vmax.f32 %v131_v34, %v174_v42  ;;  %v178_v51 = vmul.f32 0.2, %v135_v43  ;;  %v179_v52 = vmul.f32 0.2, %v136_v44 }
  0x29   :  { %v180_v53 = vmul.f32 0.2, %v137_v45  ;;  %v218_v54 = vmax.f32 %v132_v38, %v175_v46  ;;  %v219_v55 = vmax.f32 %v133_v39, %v176_v47  ;;  %v220_v56 = vmax.f32 %v134_v40, %v177_v48 }
  0x2a   :  { %v181_v57 = vmul.f32 0.2, %v138_v49  ;;  %v527_v59 = vpack.c.bf16 %v217_v50, %v217_v50  ;;  %v221_v60 = vmax.f32 %v135_v43, %v178_v51  ;;  %v222_v61 = vmax.f32 %v136_v44, %v179_v52  ;;  %v53_v44 = vld [vmem:[%s957_s0 + $0x140] sm:$0xff]  ;;  %v55_v50 = vld [vmem:[%s957_s0 + $0x150] sm:$0x3] }
  0x2b   :  { %v223_v62 = vmax.f32 %v137_v45, %v180_v53  ;;  %v528_v4 = vpack.c.bf16 %v218_v54, %v218_v54  ;;  %v529_v5 = vpack.c.bf16 %v219_v55, %v219_v55  ;;  %v530_v6 = vpack.c.bf16 %v220_v56, %v220_v56 }
  0x2c   :  { %v224_v7 = vmax.f32 %v138_v49, %v181_v57  ;;  %434 = vst.msk [vmem:[%s959_s2 + $0x60] sm:$0xf] %vm409_vm0, %v527_v59  ;;  %v531_v11 = vpack.c.bf16 %v221_v60, %v221_v60  ;;  %v532_v12 = vpack.c.bf16 %v222_v61, %v222_v61  ;;  %v92_v14 = vmul.f32 %v564_v0, %v45_v58  ;;  %v54_v49 = vld [vmem:[%s957_s0 + $0x148] sm:$0xff] }
  0x2d   :  { %v533_v13 = vpack.c.bf16 %v223_v62, %v223_v62  ;;  %435 = vst.msk [vmem:[%s959_s2 + $0x64] sm:$0xf] %vm409_vm0, %v528_v4  ;;  %436 = vst.msk [vmem:[%s959_s2 + $0x68] sm:$0xf] %vm409_vm0, %v529_v5  ;;  %v93_v17 = vmul.f32 %v564_v0, %v46_v63  ;;  %v94_v18 = vmul.f32 %v564_v0, %v47_v2 }
  0x2e   :  { %437 = vst.msk [vmem:[%s959_s2 + $0x6c] sm:$0xf] %vm409_vm0, %v530_v6  ;;  %v534_v16 = vpack.c.bf16 %v224_v7, %v224_v7  ;;  %v95_v19 = vmul.f32 %v564_v0, %v48_v3  ;;  %438 = vst.msk [vmem:[%s959_s2 + $0x70] sm:$0xf] %vm409_vm0, %v531_v11  ;;  %v139_v20 = vadd.f32 %v569_v1, %v92_v14 }
  0x2f   :  { %439 = vst.msk [vmem:[%s959_s2 + $0x74] sm:$0xf] %vm409_vm0, %v532_v12  ;;  %440 = vst.msk [vmem:[%s959_s2 + $0x78] sm:$0xf] %vm409_vm0, %v533_v13  ;;  %v96_v21 = vmul.f32 %v564_v0, %v49_v8  ;;  %v97_v22 = vmul.f32 %v564_v0, %v50_v9  ;;  %v98_v23 = vmul.f32 %v564_v0, %v51_v10 }
  0x30   :  { %441 = vst.msk [vmem:[%s959_s2 + $0x7c] sm:$0xf] %vm409_vm0, %v534_v16  ;;  %v140_v24 = vadd.f32 %v569_v1, %v93_v17  ;;  %v141_v25 = vadd.f32 %v569_v1, %v94_v18  ;;  %v142_v26 = vadd.f32 %v569_v1, %v95_v19  ;;  %v99_v27 = vmul.f32 %v564_v0, %v52_v15 }
  0x31   :  { %v182_v28 = vmul.f32 0.2, %v139_v20  ;;  %v143_v29 = vadd.f32 %v569_v1, %v96_v21  ;;  %v144_v30 = vadd.f32 %v569_v1, %v97_v22  ;;  %v145_v31 = vadd.f32 %v569_v1, %v98_v23 }
  0x32   :  { %v183_v32 = vmul.f32 0.2, %v140_v24  ;;  %v184_v33 = vmul.f32 0.2, %v141_v25  ;;  %v185_v34 = vmul.f32 0.2, %v142_v26  ;;  %v146_v35 = vadd.f32 %v569_v1, %v99_v27 }
  0x33   :  { %v225_v36 = vmax.f32 %v139_v20, %v182_v28  ;;  %v186_v37 = vmul.f32 0.2, %v143_v29  ;;  %v187_v38 = vmul.f32 0.2, %v144_v30  ;;  %v188_v39 = vmul.f32 0.2, %v145_v31 }
  0x34   :  { %v226_v40 = vmax.f32 %v140_v24, %v183_v32  ;;  %v227_v41 = vmax.f32 %v141_v25, %v184_v33  ;;  %v228_v42 = vmax.f32 %v142_v26, %v185_v34  ;;  %v189_v43 = vmul.f32 0.2, %v146_v35 }
  0x35   :  { %v535_v45 = vpack.c.bf16 %v225_v36, %v225_v36  ;;  %v229_v46 = vmax.f32 %v143_v29, %v186_v37  ;;  %v230_v47 = vmax.f32 %v144_v30, %v187_v38  ;;  %v231_v48 = vmax.f32 %v145_v31, %v188_v39 }
  0x36   :  { %v536_v51 = vpack.c.bf16 %v226_v40, %v226_v40  ;;  %v537_v52 = vpack.c.bf16 %v227_v41, %v227_v41  ;;  %v538_v53 = vpack.c.bf16 %v228_v42, %v228_v42  ;;  %v232_v54 = vmax.f32 %v146_v35, %v189_v43 }
  0x37   :  { %442 = vst.msk [vmem:[%s959_s2 + $0x80] sm:$0xf] %vm409_vm0, %v535_v45  ;;  %v539_v55 = vpack.c.bf16 %v229_v46, %v229_v46  ;;  %v540_v56 = vpack.c.bf16 %v230_v47, %v230_v47  ;;  %v541_v57 = vpack.c.bf16 %v231_v48, %v231_v48  ;;  %v100_v58 = vmul.f32 %v564_v0, %v53_v44 }
  0x38   :  { %443 = vst.msk [vmem:[%s959_s2 + $0x84] sm:$0xf] %vm409_vm0, %v536_v51  ;;  %444 = vst.msk [vmem:[%s959_s2 + $0x88] sm:$0xf] %vm409_vm0, %v537_v52  ;;  %v542_v59 = vpack.c.bf16 %v232_v54, %v232_v54  ;;  %v101_v60 = vmul.f32 %v564_v0, %v54_v49  ;;  %v102_v61 = vmul.f32 %v564_v0, %v55_v50 }
  0x39   :  { %445 = vst.msk [vmem:[%s959_s2 + $0x8c] sm:$0xf] %vm409_vm0, %v538_v53  ;;  %446 = vst.msk [vmem:[%s959_s2 + $0x90] sm:$0xf] %vm409_vm0, %v539_v55  ;;  %v147_v62 = vadd.f32 %v569_v1, %v100_v58 }
  0x3a   :  { %447 = vst.msk [vmem:[%s959_s2 + $0x94] sm:$0xf] %vm409_vm0, %v540_v56  ;;  %448 = vst.msk [vmem:[%s959_s2 + $0x98] sm:$0xf] %vm409_vm0, %v541_v57  ;;  %v148_v0 = vadd.f32 %v569_v1, %v101_v60  ;;  %v149_v63 = vadd.f32 %v569_v1, %v102_v61 }
  0x3b   :  { %449 = vst.msk [vmem:[%s959_s2 + $0x9c] sm:$0xf] %vm409_vm0, %v542_v59  ;;  %v190_v2 = vmul.f32 0.2, %v147_v62 }
  0x3c   :  { %v191_v3 = vmul.f32 0.2, %v148_v0  ;;  %v192_v4 = vmul.f32 0.2, %v149_v63 }
  0x3d   :  { %v233_v5 = vmax.f32 %v147_v62, %v190_v2 }
  0x3e   :  { %v234_v6 = vmax.f32 %v148_v0, %v191_v3  ;;  %v235_v7 = vmax.f32 %v149_v63, %v192_v4 }
  0x3f   :  { %v543_v8 = vpack.c.bf16 %v233_v5, %v233_v5 }
  0x40   :  { %v544_v9 = vpack.c.bf16 %v234_v6, %v234_v6  ;;  %v545_v10 = vpack.c.bf16 %v235_v7, %v235_v7 }
  0x41   :  { %450 = vst.msk [vmem:[%s959_s2 + $0xa0] sm:$0xf] %vm409_vm0, %v543_v8 }
  0x42   :  { %451 = vst.msk [vmem:[%s959_s2 + $0xa4] sm:$0xf] %vm409_vm0, %v544_v9 }
  0x43   :  { %453 = vst.msk [vmem:[%s959_s2 + $0xa8] sm:$0x1] %vm452_vm1, %v545_v10 }

// kernel: discriminator_forward.4
= control target key start
LH: loop header
LB: loop body
LE: loop exit
PB: predicated region body
PF: predicated region fallthrough
CT: control target
= control target key end

     0   :  { %vm185_vm0 = vcmask 130048   ;;  %vm24_vm1 = vcmask 517120   ;;  %v1170_v23 = vmov 0.0   ;;  %vm460_vm2 = vcmask 523264   ;;  %s1685_s1 = inlined_call_operand.vmem [shape: bf16[16,64], index: 1, kind: input, shape index: {}]   ;;  %s1686_s0 = inlined_call_operand.vmem [shape: bf16[338,16], index: 0, kind: input, shape index: {}]   ;;  %s1687_s5 = inlined_call_operand.vmem [shape: f32[2,64], index: 5, kind: output, shape index: {1}]   ;;  %s1688_s4 = inlined_call_operand.vmem [shape: f32[338,64], index: 4, kind: output, shape index: {0}]   ;;  %s1689_s2 = inlined_call_operand.vmem [shape: f32[1,64], index: 2, kind: input, shape index: {}]   ;;  %s1690_s3 = inlined_call_operand.vmem [shape: f32[1,64], index: 3, kind: input, shape index: {}]  }
   0x1   :  { %v1145_v0 = vld [vmem:[%s1685_s1] sm:$0xff]   ;;  %v1147_v2 = vld [vmem:[%s1686_s0 + $0x8] sm:$0xff]   ;;  %v1148_v3 = vld [vmem:[%s1686_s0 + $0x10] sm:$0xff]   ;;  %25 = vst.msk [vmem:[%s1687_s5] sm:$0x3] %vm24_vm1, %v1170_v23  ;;  %vm991_vm4 = vcmask 1040384  }
   0x2   :  { %v1146_v1 = vld [vmem:[%s1686_s0] sm:$0xff]   ;;  %1096 = vmatprep.subr.bf16.mxu0 %v1145_v0  ;;  %1142 = vmatprep.subr.bf16.mxu1 %v1145_v0  ;;  %v1149_v4 = vld [vmem:[%s1686_s0 + $0x18] sm:$0xff]   ;;  %v1159_v7 = vld [vmem:[%s1686_s0 + $0x68] sm:$0xff]  }
   0x3   :  { %1097 = vmatpush3.bf16.msra.mxu0 %v1145_v0  ;;  %1098 = vmatprep.mubr.msk.bf16.mxu0 %vm185_vm0, %v1146_v1  ;;  %v1150_v5 = vld [vmem:[%s1686_s0 + $0x20] sm:$0xff]   ;;  %v1160_v8 = vld [vmem:[%s1686_s0 + $0x70] sm:$0xff]   ;;  %v1151_v9 = vld [vmem:[%s1686_s0 + $0x28] sm:$0xff]  }
   0x4   :  { %1143 = vmatpush3.bf16.msra.mxu1 %v1145_v0  ;;  %v1158_v6 = vld [vmem:[%s1686_s0 + $0x60] sm:$0xff]   ;;  %v1152_v10 = vld [vmem:[%s1686_s0 + $0x30] sm:$0xff]   ;;  %v1161_v11 = vld [vmem:[%s1686_s0 + $0x78] sm:$0xff]  }
   0x5   :  { %1122 = vmatprep.mubr.msk.bf16.mxu1 %vm185_vm0, %v1158_v6  ;;  %v1162_v12 = vld [vmem:[%s1686_s0 + $0x80] sm:$0xff]   ;;  %v1153_v13 = vld [vmem:[%s1686_s0 + $0x38] sm:$0xff]   ;;  %v1163_v15 = vld [vmem:[%s1686_s0 + $0x88] sm:$0xff]  }
   0x6   :  { %1099 = vmatmul.mubr.msk.bf16.vlgmr.msra.gmra.mrb[0].mxu0 %vm185_vm0, %v1147_v2  ;;  %v1154_v14 = vld [vmem:[%s1686_s0 + $0x40] sm:$0xff]   ;;  %v1164_v16 = vld [vmem:[%s1686_s0 + $0x90] sm:$0xff]   ;;  %v1155_v17 = vld [vmem:[%s1686_s0 + $0x48] sm:$0xff]  }
   0x7   :  { %1102 = vmatprep.mubr.msk.bf16.mxu0 %vm185_vm0, %v1148_v3  ;;  %1123 = vmatmul.mubr.msk.bf16.vlgmr.msra.gmra.mrb[0].mxu1 %vm185_vm0, %v1159_v7  ;;  %v1156_v18 = vld [vmem:[%s1686_s0 + $0x50] sm:$0xff]   ;;  %v1165_v19 = vld [vmem:[%s1686_s0 + $0x98] sm:$0xff]   ;;  %v1166_v20 = vld [vmem:[%s1686_s0 + $0xa0] sm:$0xff]  }
   0x8   :  { %1126 = vmatprep.mubr.msk.bf16.mxu1 %vm185_vm0, %v1160_v8  ;;  %v1157_v21 = vld [vmem:[%s1686_s0 + $0x58] sm:$0xff]   ;;  %v1167_v22 = vld [vmem:[%s1686_s0 + $0xa8] ss:$0 sps:$4 sm:$0x11]  }
   0xe   :  { %1103 = vmatmul.mubr.msk.bf16.gmra.mrb[4].mxu0 %vm185_vm0, %v1149_v4 }
   0xf   :  { %1106 = vmatprep.mubr.msk.bf16.mxu0 %vm185_vm0, %v1150_v5  ;;  %1127 = vmatmul.mubr.msk.bf16.gmra.mrb[4].mxu1 %vm185_vm0, %v1161_v11 }
  0x10   :  { %1130 = vmatprep.mubr.msk.bf16.mxu1 %vm185_vm0, %v1162_v12 }
  0x16   :  { %1107 = vmatmul.mubr.msk.bf16.gmra.mrb[8].mxu0 %vm185_vm0, %v1151_v9 }
  0x17   :  { %1110 = vmatprep.mubr.msk.bf16.mxu0 %vm185_vm0, %v1152_v10  ;;  %1131 = vmatmul.mubr.msk.bf16.gmra.mrb[8].mxu1 %vm185_vm0, %v1163_v15 }
  0x18   :  { %1134 = vmatprep.mubr.msk.bf16.mxu1 %vm185_vm0, %v1164_v16 }
  0x1e   :  { %1111 = vmatmul.mubr.msk.bf16.gmra.mrb[12].mxu0 %vm185_vm0, %v1153_v13 }
  0x1f   :  { %1114 = vmatprep.mubr.msk.bf16.mxu0 %vm185_vm0, %v1154_v14  ;;  %1135 = vmatmul.mubr.msk.bf16.gmra.mrb[12].mxu1 %vm185_vm0, %v1165_v19 }
  0x20   :  { %1138 = vmatprep.mubr.msk.bf16.mxu1 %vm185_vm0, %v1166_v20 }
  0x26   :  { %1115 = vmatmul.mubr.msk.bf16.gmra.mrb[16].mxu0 %vm185_vm0, %v1155_v17 }
  0x27   :  { %1118 = vmatprep.mubr.msk.bf16.mxu0 %vm185_vm0, %v1156_v18  ;;  %1139 = vmatmul.mubr.msk.bf16.gmra.mrb[16].mxu1 %vm185_vm0, %v1167_v22 }
  0x2e   :  { %1119 = vmatmul.mubr.msk.bf16.gmra.mrb[20].mxu0 %vm185_vm0, %v1157_v21 }
  0xd9   :  { %v1100_v24 = vpop.f32.mrb[0].mxu0 }
  0xda   :  { %463 = vst.msk [vmem:[%s1688_s4 + $0x10] sm:$0xff] %vm460_vm2, %v1100_v24  ;;  %v286_v25 = vpop.f32.mrb[1].mxu0  ;;  %v859_v29 = vmul.f32 %v1100_v24, %v1100_v24  ;;  %v769_v34 = vsel %vm460_vm2, %v1100_v24, 0.0  ;;  %v1329_v50 = vpop.f32.mrb[0].mxu1 }
  0xdb   :  { %461 = vst.msk [vmem:[%s1688_s4] sm:$0xff] %vm460_vm2, %v286_v25  ;;  %v857_v26 = vmul.f32 %v286_v25, %v286_v25  ;;  %v1101_v27 = vpop.f32.mrb[2].mxu0  ;;  %v766_v30 = vsel %vm460_vm2, %v286_v25, 0.0  ;;  %487 = vst.msk [vmem:[%s1688_s4 + $0xd0] sm:$0xff] %vm460_vm2, %v1329_v50  ;;  %v1340_v54 = vpop.f32.mrb[1].mxu1 }
  0xdc   :  { %464 = vst.msk [vmem:[%s1688_s4 + $0x18] sm:$0xff] %vm460_vm2, %v1101_v27  ;;  %v289_v28 = vpop.f32.mrb[3].mxu0  ;;  %v860_v36 = vmul.f32 %v1101_v27, %v1101_v27  ;;  %v903_v40 = vsel %vm460_vm2, %v859_v29, 0.0  ;;  %v771_v41 = vsel %vm460_vm2, %v1101_v27, 0.0  ;;  %485 = vst.msk [vmem:[%s1688_s4 + $0xc0] sm:$0xff] %vm460_vm2, %v1340_v54  ;;  %v1353_v59 = vpop.f32.mrb[2].mxu1 }
  0xdd   :  { %462 = vst.msk [vmem:[%s1688_s4 + $0x8] sm:$0xff] %vm460_vm2, %v289_v28  ;;  %v767_v31 = vsel %vm460_vm2, %v289_v28, 0.0  ;;  %v858_v32 = vmul.f32 %v289_v28, %v289_v28  ;;  %v900_v35 = vsel %vm460_vm2, %v857_v26, 0.0  ;;  %488 = vst.msk [vmem:[%s1688_s4 + $0xd8] sm:$0xff] %vm460_vm2, %v1353_v59  ;;  %v1360_v62 = vpop.f32.mrb[3].mxu1 }
  0xde   :  { %v768_v33 = vadd.f32 %v767_v31, %v766_v30  ;;  %v905_v46 = vsel %vm460_vm2, %v860_v36, 0.0  ;;  %486 = vst.msk [vmem:[%s1688_s4 + $0xc8] sm:$0xff] %vm460_vm2, %v1360_v62 }
  0xdf   :  { %v901_v37 = vsel %vm460_vm2, %v858_v32, 0.0 }
  0xe0   :  { %v770_v38 = vadd.f32 %v769_v34, %v768_v33  ;;  %v902_v39 = vadd.f32 %v901_v37, %v900_v35 }
  0xe1   :  { %v1104_v42 = vpop.f32.mrb[4].mxu0 }
  0xe2   :  { %v904_v43 = vadd.f32 %v903_v40, %v902_v39  ;;  %467 = vst.msk [vmem:[%s1688_s4 + $0x30] sm:$0xff] %vm460_vm2, %v1104_v42  ;;  %v302_v44 = vpop.f32.mrb[5].mxu0  ;;  %v772_v45 = vadd.f32 %v771_v41, %v770_v38  ;;  %v863_v55 = vmul.f32 %v1104_v42, %v1104_v42  ;;  %v777_v63 = vsel %vm460_vm2, %v1104_v42, 0.0  ;;  %v1381_v14 = vpop.f32.mrb[4].mxu1 }
  0xe3   :  { %465 = vst.msk [vmem:[%s1688_s4 + $0x20] sm:$0xff] %vm460_vm2, %v302_v44  ;;  %v773_v47 = vsel %vm460_vm2, %v302_v44, 0.0  ;;  %v861_v48 = vmul.f32 %v302_v44, %v302_v44  ;;  %v1105_v49 = vpop.f32.mrb[6].mxu0  ;;  %491 = vst.msk [vmem:[%s1688_s4 + $0xf0] sm:$0xff] %vm460_vm2, %v1381_v14  ;;  %v1392_v18 = vpop.f32.mrb[5].mxu1 }
  0xe4   :  { %v774_v51 = vadd.f32 %v773_v47, %v772_v45  ;;  %v906_v52 = vadd.f32 %v905_v46, %v904_v43  ;;  %468 = vst.msk [vmem:[%s1688_s4 + $0x38] sm:$0xff] %vm460_vm2, %v1105_v49  ;;  %v305_v53 = vpop.f32.mrb[7].mxu0  ;;  %v864_v0 = vmul.f32 %v1105_v49, %v1105_v49  ;;  %v911_v4 = vsel %vm460_vm2, %v863_v55, 0.0  ;;  %489 = vst.msk [vmem:[%s1688_s4 + $0xe0] sm:$0xff] %vm460_vm2, %v1392_v18  ;;  %v1129_v23 = vpop.f32.mrb[6].mxu1 }
  0xe5   :  { %v907_v56 = vsel %vm460_vm2, %v861_v48, 0.0  ;;  %466 = vst.msk [vmem:[%s1688_s4 + $0x28] sm:$0xff] %vm460_vm2, %v305_v53  ;;  %v775_v57 = vsel %vm460_vm2, %v305_v53, 0.0  ;;  %v862_v58 = vmul.f32 %v305_v53, %v305_v53  ;;  %v779_v5 = vsel %vm460_vm2, %v1105_v49, 0.0  ;;  %492 = vst.msk [vmem:[%s1688_s4 + $0xf8] sm:$0xff] %vm460_vm2, %v1129_v23  ;;  %v1409_v26 = vpop.f32.mrb[7].mxu1 }
  0xe6   :  { %v908_v60 = vadd.f32 %v907_v56, %v906_v52  ;;  %v776_v61 = vadd.f32 %v775_v57, %v774_v51  ;;  %v913_v10 = vsel %vm460_vm2, %v864_v0, 0.0  ;;  %490 = vst.msk [vmem:[%s1688_s4 + $0xe8] sm:$0xff] %vm460_vm2, %v1409_v26  ;;  %v1419_v32 = vsel %vm460_vm2, %v1129_v23, 0.0 }
  0xe7   :  { %v909_v1 = vsel %vm460_vm2, %v862_v58, 0.0  ;;  %v888_v36 = vmul.f32 %v1129_v23, %v1129_v23 }
  0xe8   :  { %v778_v2 = vadd.f32 %v777_v63, %v776_v61  ;;  %v910_v3 = vadd.f32 %v909_v1, %v908_v60 }
  0xe9   :  { %v1108_v6 = vpop.f32.mrb[8].mxu0  ;;  %v1434_v45 = vsel %vm460_vm2, %v888_v36, 0.0 }
  0xea   :  { %v912_v7 = vadd.f32 %v911_v4, %v910_v3  ;;  %471 = vst.msk [vmem:[%s1688_s4 + $0x50] sm:$0xff] %vm460_vm2, %v1108_v6  ;;  %v318_v8 = vpop.f32.mrb[9].mxu0  ;;  %v780_v9 = vadd.f32 %v779_v5, %v778_v2  ;;  %v867_v19 = vmul.f32 %v1108_v6, %v1108_v6  ;;  %v785_v27 = vsel %vm460_vm2, %v1108_v6, 0.0  ;;  %v1132_v46 = vpop.f32.mrb[8].mxu1 }
  0xeb   :  { %469 = vst.msk [vmem:[%s1688_s4 + $0x40] sm:$0xff] %vm460_vm2, %v318_v8  ;;  %v781_v11 = vsel %vm460_vm2, %v318_v8, 0.0  ;;  %v865_v12 = vmul.f32 %v318_v8, %v318_v8  ;;  %v1109_v13 = vpop.f32.mrb[10].mxu0  ;;  %495 = vst.msk [vmem:[%s1688_s4 + $0x110] sm:$0xff] %vm460_vm2, %v1132_v46  ;;  %v414_v53 = vpop.f32.mrb[9].mxu1  ;;  %v1457_v0 = vsel %vm460_vm2, %v1132_v46, 0.0  ;;  %v891_v1 = vmul.f32 %v1132_v46, %v1132_v46 }
  0xec   :  { %v782_v15 = vadd.f32 %v781_v11, %v780_v9  ;;  %v914_v16 = vadd.f32 %v913_v10, %v912_v7  ;;  %472 = vst.msk [vmem:[%s1688_s4 + $0x58] sm:$0xff] %vm460_vm2, %v1109_v13  ;;  %v321_v17 = vpop.f32.mrb[11].mxu0  ;;  %v868_v28 = vmul.f32 %v1109_v13, %v1109_v13  ;;  %v919_v33 = vsel %vm460_vm2, %v867_v19, 0.0  ;;  %493 = vst.msk [vmem:[%s1688_s4 + $0x100] sm:$0xff] %vm460_vm2, %v414_v53  ;;  %v1133_v60 = vpop.f32.mrb[10].mxu1 }
  0xed   :  { %v915_v20 = vsel %vm460_vm2, %v865_v12, 0.0  ;;  %470 = vst.msk [vmem:[%s1688_s4 + $0x48] sm:$0xff] %vm460_vm2, %v321_v17  ;;  %v783_v21 = vsel %vm460_vm2, %v321_v17, 0.0  ;;  %v866_v22 = vmul.f32 %v321_v17, %v321_v17  ;;  %v787_v34 = vsel %vm460_vm2, %v1109_v13, 0.0  ;;  %496 = vst.msk [vmem:[%s1688_s4 + $0x118] sm:$0xff] %vm460_vm2, %v1133_v60  ;;  %v417_v2 = vpop.f32.mrb[11].mxu1 }
  0xee   :  { %v916_v24 = vadd.f32 %v915_v20, %v914_v16  ;;  %v784_v25 = vadd.f32 %v783_v21, %v782_v15  ;;  %v921_v41 = vsel %vm460_vm2, %v868_v28, 0.0  ;;  %v1466_v5 = vsel %vm460_vm2, %v414_v53, 0.0  ;;  %494 = vst.msk [vmem:[%s1688_s4 + $0x108] sm:$0xff] %vm460_vm2, %v417_v2 }
  0xef   :  { %v917_v29 = vsel %vm460_vm2, %v866_v22, 0.0  ;;  %v889_v6 = vmul.f32 %v414_v53, %v414_v53  ;;  %v1473_v9 = vsel %vm460_vm2, %v891_v1, 0.0  ;;  %v1476_v10 = vsel %vm460_vm2, %v1133_v60, 0.0 }
  0xf0   :  { %v786_v30 = vadd.f32 %v785_v27, %v784_v25  ;;  %v918_v31 = vadd.f32 %v917_v29, %v916_v24  ;;  %v892_v13 = vmul.f32 %v1133_v60, %v1133_v60  ;;  %v1482_v15 = vsel %vm460_vm2, %v417_v2, 0.0 }
  0xf1   :  { %v1112_v35 = vpop.f32.mrb[12].mxu0  ;;  %v1479_v12 = vsel %vm460_vm2, %v889_v6, 0.0  ;;  %v890_v16 = vmul.f32 %v417_v2, %v417_v2 }
  0xf2   :  { %v920_v37 = vadd.f32 %v919_v33, %v918_v31  ;;  %475 = vst.msk [vmem:[%s1688_s4 + $0x70] sm:$0xff] %vm460_vm2, %v1112_v35  ;;  %v871_v38 = vmul.f32 %v1112_v35, %v1112_v35  ;;  %v334_v39 = vpop.f32.mrb[13].mxu0  ;;  %v788_v40 = vadd.f32 %v787_v34, %v786_v30  ;;  %v793_v47 = vsel %vm460_vm2, %v1112_v35, 0.0  ;;  %v1136_v29 = vpop.f32.mrb[12].mxu1 }
  0xf3   :  { %473 = vst.msk [vmem:[%s1688_s4 + $0x60] sm:$0xff] %vm460_vm2, %v334_v39  ;;  %v789_v42 = vsel %vm460_vm2, %v334_v39, 0.0  ;;  %v869_v43 = vmul.f32 %v334_v39, %v334_v39  ;;  %v1113_v44 = vpop.f32.mrb[14].mxu0  ;;  %v1495_v27 = vsel %vm460_vm2, %v892_v13, 0.0  ;;  %v1498_v28 = vsel %vm460_vm2, %v890_v16, 0.0  ;;  %499 = vst.msk [vmem:[%s1688_s4 + $0x130] sm:$0xff] %vm460_vm2, %v1136_v29 }
  0xf4   :  { %v927_v48 = vsel %vm460_vm2, %v871_v38, 0.0  ;;  %v790_v49 = vadd.f32 %v789_v42, %v788_v40  ;;  %v922_v51 = vadd.f32 %v921_v41, %v920_v37  ;;  %476 = vst.msk [vmem:[%s1688_s4 + $0x78] sm:$0xff] %vm460_vm2, %v1113_v44  ;;  %v337_v52 = vpop.f32.mrb[15].mxu0  ;;  %v872_v56 = vmul.f32 %v1113_v44, %v1113_v44  ;;  %v430_v36 = vpop.f32.mrb[13].mxu1 }
  0xf5   :  { %v923_v55 = vsel %vm460_vm2, %v869_v43, 0.0  ;;  %474 = vst.msk [vmem:[%s1688_s4 + $0x68] sm:$0xff] %vm460_vm2, %v337_v52  ;;  %v791_v57 = vsel %vm460_vm2, %v337_v52, 0.0  ;;  %v870_v58 = vmul.f32 %v337_v52, %v337_v52  ;;  %v795_v3 = vsel %vm460_vm2, %v1113_v44, 0.0  ;;  %497 = vst.msk [vmem:[%s1688_s4 + $0x120] sm:$0xff] %vm460_vm2, %v430_v36  ;;  %v1137_v41 = vpop.f32.mrb[14].mxu1 }
  0xf6   :  { %v924_v61 = vadd.f32 %v923_v55, %v922_v51  ;;  %v792_v63 = vadd.f32 %v791_v57, %v790_v49  ;;  %v929_v17 = vsel %vm460_vm2, %v872_v56, 0.0  ;;  %v1521_v44 = vsel %vm460_vm2, %v1136_v29, 0.0  ;;  %500 = vst.msk [vmem:[%s1688_s4 + $0x138] sm:$0xff] %vm460_vm2, %v1137_v41 }
  0xf7   :  { %v925_v4 = vsel %vm460_vm2, %v870_v58, 0.0  ;;  %v895_v46 = vmul.f32 %v1136_v29, %v1136_v29  ;;  %v1530_v51 = vsel %vm460_vm2, %v430_v36, 0.0  ;;  %v893_v52 = vmul.f32 %v430_v36, %v430_v36 }
  0xf8   :  { %v794_v7 = vadd.f32 %v793_v47, %v792_v63  ;;  %v926_v8 = vadd.f32 %v925_v4, %v924_v61  ;;  %v433_v47 = vpop.f32.mrb[15].mxu1  ;;  %v1540_v57 = vsel %vm460_vm2, %v1137_v41, 0.0  ;;  %v896_v61 = vmul.f32 %v1137_v41, %v1137_v41 }
  0xf9   :  { %v1116_v11 = vpop.f32.mrb[16].mxu0  ;;  %498 = vst.msk [vmem:[%s1688_s4 + $0x128] sm:$0xff] %vm460_vm2, %v433_v47  ;;  %v1537_v56 = vsel %vm460_vm2, %v895_v46, 0.0  ;;  %v1543_v60 = vsel %vm460_vm2, %v893_v52, 0.0  ;;  %v1546_v63 = vsel %vm460_vm2, %v433_v47, 0.0  ;;  %v894_v1 = vmul.f32 %v433_v47, %v433_v47 }
  0xfa   :  { %v928_v19 = vadd.f32 %v927_v48, %v926_v8  ;;  %479 = vst.msk [vmem:[%s1688_s4 + $0x90] sm:$0xff] %vm460_vm2, %v1116_v11  ;;  %v875_v20 = vmul.f32 %v1116_v11, %v1116_v11  ;;  %v350_v21 = vpop.f32.mrb[17].mxu0  ;;  %v796_v22 = vadd.f32 %v795_v3, %v794_v7  ;;  %v801_v30 = vsel %vm460_vm2, %v1116_v11, 0.0 }
  0xfb   :  { %477 = vst.msk [vmem:[%s1688_s4 + $0x80] sm:$0xff] %vm460_vm2, %v350_v21  ;;  %v797_v23 = vsel %vm460_vm2, %v350_v21, 0.0  ;;  %v873_v24 = vmul.f32 %v350_v21, %v350_v21  ;;  %v1117_v25 = vpop.f32.mrb[18].mxu0  ;;  %v1559_v13 = vsel %vm460_vm2, %v896_v61, 0.0  ;;  %v1562_v16 = vsel %vm460_vm2, %v894_v1, 0.0 }
  0xfc   :  { %v935_v31 = vsel %vm460_vm2, %v875_v20, 0.0  ;;  %v798_v33 = vadd.f32 %v797_v23, %v796_v22  ;;  %v930_v34 = vadd.f32 %v929_v17, %v928_v19  ;;  %480 = vst.msk [vmem:[%s1688_s4 + $0x98] sm:$0xff] %vm460_vm2, %v1117_v25  ;;  %v353_v35 = vpop.f32.mrb[19].mxu0  ;;  %v876_v38 = vmul.f32 %v1117_v25, %v1117_v25  ;;  %v1564_v17 = vpop.f32.mrb[16].mxu1 }
  0xfd   :  { %v931_v37 = vsel %vm460_vm2, %v873_v24, 0.0  ;;  %478 = vst.msk [vmem:[%s1688_s4 + $0x88] sm:$0xff] %vm460_vm2, %v353_v35  ;;  %v799_v39 = vsel %vm460_vm2, %v353_v35, 0.0  ;;  %v874_v40 = vmul.f32 %v353_v35, %v353_v35  ;;  %v803_v48 = vsel %vm460_vm2, %v1117_v25, 0.0  ;;  %v446_v22 = vpop.f32.mrb[17].mxu1 }
  0xfe   :  { %v932_v42 = vadd.f32 %v931_v37, %v930_v34  ;;  %v800_v43 = vadd.f32 %v799_v39, %v798_v33  ;;  %v937_v2 = vsel %vm460_vm2, %v876_v38, 0.0  ;;  %504 = vst.msk [vmem:[%s1688_s4 + $0x150] sm:$0x3] %vm24_vm1, %v1564_v17  ;;  %v1586_v34 = vsel %vm460_vm2, %v446_v22, 0.0 }
  0xff   :  { %v933_v49 = vsel %vm460_vm2, %v874_v40, 0.0  ;;  %501 = vst.msk [vmem:[%s1688_s4 + $0x140] sm:$0xff] %vm460_vm2, %v446_v22  ;;  %v881_v39 = vmul.f32 %v1340_v54, %v1340_v54  ;;  %v882_v1 = vmul.f32 %v1360_v62, %v1360_v62 }
 0x100   :  { %v802_v53 = vadd.f32 %v801_v30, %v800_v43  ;;  %v934_v55 = vadd.f32 %v933_v49, %v932_v42  ;;  %v1141_v30 = vpop.f32.mrb[18].mxu1  ;;  %v897_v42 = vmul.f32 %v446_v22, %v446_v22 }
 0x101   :  { %v1120_v58 = vpop.f32.mrb[20].mxu0  ;;  %v449_v35 = vpop.f32.mrb[19].mxu1  ;;  %v947_v61 = vsel %vm460_vm2, %v881_v39, 0.0 }
 0x102   :  { %v936_v3 = vadd.f32 %v935_v31, %v934_v55  ;;  %483 = vst.msk [vmem:[%s1688_s4 + $0xb0] sm:$0xff] %vm460_vm2, %v1120_v58  ;;  %v366_v4 = vpop.f32.mrb[21].mxu0  ;;  %v804_v6 = vadd.f32 %v803_v48, %v802_v53  ;;  %v879_v23 = vmul.f32 %v1120_v58, %v1120_v58  ;;  %v809_v36 = vsel %vm460_vm2, %v1120_v58, 0.0  ;;  %502 = vst.msk [vmem:[%s1688_s4 + $0x148] sm:$0xff] %vm460_vm2, %v449_v35 }
 0x103   :  { %481 = vst.msk [vmem:[%s1688_s4 + $0xa0] sm:$0xff] %vm460_vm2, %v366_v4  ;;  %v805_v7 = vsel %vm460_vm2, %v366_v4, 0.0  ;;  %v877_v8 = vmul.f32 %v366_v4, %v366_v4  ;;  %v1121_v11 = vpop.f32.mrb[22].mxu0  ;;  %v1597_v43 = vsel %vm460_vm2, %v449_v35, 0.0  ;;  %v813_v48 = vsel %vm460_vm2, %v1340_v54, 0.0 }
 0x104   :  { %v806_v19 = vadd.f32 %v805_v7, %v804_v6  ;;  %v938_v20 = vadd.f32 %v937_v2, %v936_v3  ;;  %484 = vst.msk [vmem:[%s1688_s4 + $0xb8] sm:$0xff] %vm460_vm2, %v1121_v11  ;;  %v369_v21 = vpop.f32.mrb[23].mxu0  ;;  %v880_v37 = vmul.f32 %v1121_v11, %v1121_v11  ;;  %v943_v46 = vsel %vm460_vm2, %v879_v23, 0.0 }
 0x105   :  { %v939_v24 = vsel %vm460_vm2, %v877_v8, 0.0  ;;  %482 = vst.msk [vmem:[%s1688_s4 + $0xa8] sm:$0xff] %vm460_vm2, %v369_v21  ;;  %v807_v25 = vsel %vm460_vm2, %v369_v21, 0.0  ;;  %v878_v29 = vmul.f32 %v369_v21, %v369_v21  ;;  %v811_v47 = vsel %vm460_vm2, %v1121_v11, 0.0 }
 0x106   :  { %v940_v31 = vadd.f32 %v939_v24, %v938_v20  ;;  %v808_v33 = vadd.f32 %v807_v25, %v806_v19  ;;  %v898_v49 = vmul.f32 %v449_v35, %v449_v35  ;;  %v979_v55 = vsel %vm460_vm2, %v897_v42, 0.0 }
 0x107   :  { %v941_v38 = vsel %vm460_vm2, %v878_v29, 0.0  ;;  %v945_v58 = vsel %vm460_vm2, %v880_v37, 0.0  ;;  %v883_v6 = vmul.f32 %v1329_v50, %v1329_v50  ;;  %v815_v54 = vsel %vm460_vm2, %v1360_v62, 0.0 }
 0x108   :  { %v810_v40 = vadd.f32 %v809_v36, %v808_v33  ;;  %v942_v41 = vadd.f32 %v941_v38, %v940_v31  ;;  %v981_v2 = vsel %vm460_vm2, %v898_v49, 0.0  ;;  %v817_v11 = vsel %vm460_vm2, %v1329_v50, 0.0 }
 0x109   :  { %v884_v19 = vmul.f32 %v1353_v59, %v1353_v59  ;;  %v949_v20 = vsel %vm460_vm2, %v882_v1, 0.0  ;;  %v885_v21 = vmul.f32 %v1392_v18, %v1392_v18  ;;  %v951_v24 = vsel %vm460_vm2, %v883_v6, 0.0 }
 0x10a   :  { %v944_v52 = vadd.f32 %v943_v46, %v942_v41  ;;  %v812_v53 = vadd.f32 %v811_v47, %v810_v40  ;;  %v819_v62 = vsel %vm460_vm2, %v1353_v59, 0.0  ;;  %v821_v25 = vsel %vm460_vm2, %v1392_v18, 0.0 }
 0x10b   :  { %v953_v30 = vsel %vm460_vm2, %v884_v19, 0.0  ;;  %v955_v31 = vsel %vm460_vm2, %v885_v21, 0.0  ;;  %v886_v33 = vmul.f32 %v1409_v26, %v1409_v26  ;;  %v887_v37 = vmul.f32 %v1381_v14, %v1381_v14 }
 0x10c   :  { %v814_v3 = vadd.f32 %v813_v48, %v812_v53  ;;  %v946_v4 = vadd.f32 %v945_v58, %v944_v52  ;;  %v823_v59 = vsel %vm460_vm2, %v1409_v26, 0.0  ;;  %v825_v18 = vsel %vm460_vm2, %v1381_v14, 0.0 }
 0x10d   :  { %v957_v40 = vsel %vm460_vm2, %v886_v33, 0.0  ;;  %v959_v46 = vsel %vm460_vm2, %v887_v37, 0.0  ;;  %v506_v49 = vlaneseq }
 0x10e   :  { %v948_v7 = vadd.f32 %v947_v61, %v946_v4  ;;  %v816_v8 = vadd.f32 %v815_v54, %v814_v3 }
 0x10f   :  { %v507_v61 = vshrl.u32 %v506_v49, 7 }
 0x110   :  { %v818_v22 = vadd.f32 %v817_v11, %v816_v8  ;;  %v950_v23 = vadd.f32 %v949_v20, %v948_v7 }
 0x111   :  { %v549_v6 = vadd.s32 336, %v507_v61 }
 0x112   :  { %v952_v29 = vadd.f32 %v951_v24, %v950_v23  ;;  %v820_v50 = vadd.f32 %v819_v62, %v818_v22 }
 0x113   :  { %vm636_vm3 = vcmp.lt.s32.totalorder %v549_v6, 338 }
 0x114   :  { %v822_v35 = vadd.f32 %v821_v25, %v820_v50  ;;  %v954_v36 = vadd.f32 %v953_v30, %v952_v29 }
 0x116   :  { %v956_v38 = vadd.f32 %v955_v31, %v954_v36  ;;  %v824_v39 = vadd.f32 %v823_v59, %v822_v35  ;;  %v1005_v36 = vld [vmem:[%s1689_s2] sm:$0x1] }
 0x118   :  { %v826_v41 = vadd.f32 %v825_v18, %v824_v39  ;;  %v958_v42 = vadd.f32 %v957_v40, %v956_v38  ;;  %v1009_v38 = vld [vmem:[%s1690_s3] sm:$0x1]  ;;  %v1015_v39 = vsub.s32 0, %v507_v61 }
 0x11a   :  { %v960_v47 = vadd.f32 %v959_v46, %v958_v42  ;;  %v828_v48 = vadd.f32 %v1419_v32, %v826_v41 }
 0x11c   :  { %v830_v52 = vadd.f32 %v1466_v5, %v828_v48  ;;  %v962_v53 = vadd.f32 %v1434_v45, %v960_v47 }
 0x11e   :  { %v964_v26 = vadd.f32 %v1479_v12, %v962_v53  ;;  %v832_v58 = vadd.f32 %v1482_v15, %v830_v52 }
 0x120   :  { %v834_v14 = vadd.f32 %v1457_v0, %v832_v58  ;;  %v966_v1 = vadd.f32 %v1498_v28, %v964_v26 }
 0x122   :  { %v968_v3 = vadd.f32 %v1473_v9, %v966_v1  ;;  %v836_v4 = vadd.f32 %v1476_v10, %v834_v14  ;;  %v765_v9 = vsel %vm636_vm3, %v1564_v17, 0.0 }
 0x124   :  { %v838_v32 = vadd.f32 %v1530_v51, %v836_v4  ;;  %v970_v5 = vadd.f32 %v1495_v27, %v968_v3  ;;  %v899_v27 = vmul.f32 %v765_v9, %v765_v9 }
 0x126   :  { %v972_v45 = vadd.f32 %v1543_v60, %v970_v5  ;;  %v840_v12 = vadd.f32 %v1546_v63, %v838_v32  ;;  %v849_v63 = vsel %vm24_vm1, %v765_v9, 0.0 }
 0x128   :  { %v842_v15 = vadd.f32 %v1521_v44, %v840_v12  ;;  %v974_v0 = vadd.f32 %v1562_v16, %v972_v45  ;;  %v983_v16 = vsel %vm24_vm1, %v899_v27, 0.0 }
 0x12a   :  { %v976_v28 = vadd.f32 %v1537_v56, %v974_v0  ;;  %v844_v10 = vadd.f32 %v1540_v57, %v842_v15 }
 0x12c   :  { %v846_v54 = vadd.f32 %v1586_v34, %v844_v10  ;;  %v978_v51 = vadd.f32 %v1559_v13, %v976_v28 }
 0x12e   :  { %v980_v7 = vadd.f32 %v979_v55, %v978_v51  ;;  %v848_v60 = vadd.f32 %v1597_v43, %v846_v54 }
 0x130   :  { %v850_v8 = vadd.f32 %v849_v63, %v848_v60  ;;  %v982_v44 = vadd.f32 %v981_v2, %v980_v7  ;;  %v993_v2 = vld [vmem:[%s1687_s5] sm:$0x3] }
 0x132   :  { %v851_v11 = vrot.slane %v850_v8, 4  ;;  %v984_v56 = vadd.f32 %v983_v16, %v982_v44 }
 0x134   :  { %v852_v19 = vadd.f32 %v851_v11, %v850_v8  ;;  %v985_v17 = vrot.slane %v984_v56, 4 }
 0x136   :  { %v853_v20 = vrot.slane %v852_v19, 2  ;;  %v986_v57 = vadd.f32 %v985_v17, %v984_v56 }
 0x138   :  { %v854_v21 = vadd.f32 %v853_v20, %v852_v19  ;;  %v987_v34 = vrot.slane %v986_v57, 2 }
 0x13a   :  { %v855_v22 = vrot.slane %v854_v21, 1  ;;  %v988_v13 = vadd.f32 %v987_v34, %v986_v57 }
 0x13c   :  { %v989_v23 = vrot.slane %v988_v13, 1  ;;  %v856_v55 = vadd.f32 %v855_v22, %v854_v21 }
 0x13e   :  { %v990_v43 = vadd.f32 %v989_v23, %v988_v13 }
 0x140   :  { %v992_v24 = vsel %vm991_vm4, %v856_v55, %v990_v43 }
 0x141   :  { %v994_v62 = vadd.f32 %v993_v2, %v992_v24 }
 0x143   :  { %995 = vst.msk [vmem:[%s1687_s5] sm:$0x3] %vm24_vm1, %v994_v62 }
 0x14a   :  { %v999_v25 = vld [vmem:[%s1687_s5] sm:$0x1]  ;;  %v1001_v29 = vld [vmem:[%s1687_s5 + $0x1] sm:$0x1] }
 0x14b   :  { %v1000_v50 = vmul.f32 0.00295858, %v999_v25  ;;  %v1002_v30 = vmul.f32 0.00295858, %v1001_v29 }
 0x14d   :  { %v1003_v31 = vmul.f32 %v1000_v50, %v1000_v50 }
 0x14f   :  { %v1004_v33 = vsub.f32 %v1002_v30, %v1003_v31 }
 0x151   :  { %v1006_v35 = vadd.f32 1e-05, %v1004_v33 }
 0x153   :  { %1168 = vrsqrt.f32 %v1006_v35 }
 0x15d   :  { %v1169_v37 = vpop.eup %1168 }
 0x15e   :  { %v1008_v59 = vmul.f32 %v1169_v37, %v1005_v36 }
 0x160   :  { %v1010_v18 = vmul.f32 %v1008_v59, %v1000_v50 }
 0x162   :  { %v1011_v40 = vsub.f32 %v1009_v38, %v1010_v18 }
 0x164   :  { %v1016_v41 = vrot.slane %v1011_v40, %v1015_v39 }
 0x166   :  { %v1018_v42 = vsel %vm991_vm4, %v1008_v59, %v1016_v41 }
 0x167   :  { %1019 = vst.msk [vmem:[%s1687_s5] sm:$0x3] %vm24_vm1, %v1018_v42 }

// kernel: discriminator_forward.7
= control target key start
LH: loop header
LB: loop body
LE: loop exit
PB: predicated region body
PF: predicated region fallthrough
CT: control target
= control target key end

     0   :  { %vm86_vm0 = vcmask 1040384   ;;  %vm125_vm1 = vcmask 1041409   ;;  %vm128_vm2 = vcmask 1024   ;;  %s213_s0 = inlined_call_operand.vmem [shape: f32[2,25,128], index: 0, kind: input, shape index: {}]   ;;  %s214_s1 = inlined_call_operand.vmem [shape: f32[2,128], index: 1, kind: input, shape index: {}]   ;;  %s215_s2 = inlined_call_operand.vmem [shape: f32[25,128], index: 2, kind: input, shape index: {}]   ;;  %s216_s3 = inlined_call_operand.<no memory space> [shape: f32[1,1], index: 3, kind: input, shape index: {}]   ;;  %s217_s4 = inlined_call_operand.vmem [shape: f32[2,1], index: 4, kind: output, shape index: {}]  }
   0x1   :  { %v134_v0 = vld [vmem:[%s214_s1] ss:$0 sm:$0xff]  ;;  %v135_v1 = vld [vmem:[%s214_s1 + $0x1] ss:$0 sm:$0xff]  ;;  %v25_v5 = vld [vmem:[%s213_s0 + $0x28] sm:$0xff] }
   0x2   :  { %v24_v2 = vld [vmem:[%s213_s0 + $0x20] sm:$0xff]  ;;  %v37_v7 = vmul.f32 %v134_v0, %v25_v5  ;;  %v21_v8 = vld [vmem:[%s213_s0 + $0x8] sm:$0xff]  ;;  %v26_v9 = vld [vmem:[%s213_s0 + $0x30] sm:$0xff] }
   0x3   :  { %v36_v3 = vmul.f32 %v134_v0, %v24_v2  ;;  %v20_v4 = vld [vmem:[%s213_s0] sm:$0xff]  ;;  %v33_v11 = vmul.f32 %v134_v0, %v21_v8  ;;  %v38_v12 = vmul.f32 %v134_v0, %v26_v9  ;;  %v22_v13 = vld [vmem:[%s213_s0 + $0x10] sm:$0xff]  ;;  %v27_v14 = vld [vmem:[%s213_s0 + $0x38] sm:$0x1] }
   0x4   :  { %v32_v6 = vmul.f32 %v134_v0, %v20_v4  ;;  %v49_v16 = vadd.f32 %v135_v1, %v37_v7  ;;  %v34_v17 = vmul.f32 %v134_v0, %v22_v13  ;;  %v39_v18 = vmul.f32 %v134_v0, %v27_v14  ;;  %v23_v19 = vld [vmem:[%s213_s0 + $0x18] sm:$0x1]  ;;  %v68_v24 = vld [vmem:[%s215_s2] sm:$0xff]  ;;  %v69_v35 = vld [vmem:[%s215_s2 + $0x8] sm:$0xff] }
   0x5   :  { %v48_v10 = vadd.f32 %v135_v1, %v36_v3  ;;  %v45_v21 = vadd.f32 %v135_v1, %v33_v11  ;;  %v50_v22 = vadd.f32 %v135_v1, %v38_v12  ;;  %v35_v23 = vmul.f32 %v134_v0, %v23_v19  ;;  %v70_v45 = vld [vmem:[%s215_s2 + $0x10] sm:$0xff]  ;;  %v71_v48 = vld [vmem:[%s215_s2 + $0x18] sm:$0x1] }
   0x6   :  { %v44_v15 = vadd.f32 %v135_v1, %v32_v6  ;;  %v57_v26 = vmul.f32 0.2, %v49_v16  ;;  %v46_v27 = vadd.f32 %v135_v1, %v34_v17  ;;  %v51_v28 = vadd.f32 %v135_v1, %v39_v18 }
   0x7   :  { %v56_v20 = vmul.f32 0.2, %v48_v10  ;;  %v53_v30 = vmul.f32 0.2, %v45_v21  ;;  %v58_v31 = vmul.f32 0.2, %v50_v22  ;;  %v47_v32 = vadd.f32 %v135_v1, %v35_v23 }
   0x8   :  { %v52_v25 = vmul.f32 0.2, %v44_v15  ;;  %v65_v34 = vmax.f32 %v49_v16, %v57_v26  ;;  %v54_v36 = vmul.f32 0.2, %v46_v27  ;;  %v59_v37 = vmul.f32 0.2, %v51_v28 }
   0x9   :  { %v64_v29 = vmax.f32 %v48_v10, %v56_v20  ;;  %v61_v39 = vmax.f32 %v45_v21, %v53_v30  ;;  %v55_v40 = vmul.f32 0.2, %v47_v32  ;;  %v66_v43 = vmax.f32 %v50_v22, %v58_v31 }
   0xa   :  { %v60_v33 = vmax.f32 %v44_v15, %v52_v25  ;;  %v77_v42 = vmul.f32 %v69_v35, %v65_v34  ;;  %v62_v46 = vmax.f32 %v46_v27, %v54_v36  ;;  %v67_v47 = vmax.f32 %v51_v28, %v59_v37 }
   0xb   :  { %v76_v38 = vmul.f32 %v68_v24, %v64_v29  ;;  %v73_v44 = vmul.f32 %v69_v35, %v61_v39  ;;  %v63_v49 = vmax.f32 %v47_v32, %v55_v40  ;;  %v78_v50 = vmul.f32 %v70_v45, %v66_v43 }
   0xc   :  { %v72_v41 = vmul.f32 %v68_v24, %v60_v33  ;;  %v74_v51 = vmul.f32 %v70_v45, %v62_v46  ;;  %v79_v52 = vmul.f32 %v71_v48, %v67_v47  ;;  %v120_v17 = vstv %s216_s3 }
   0xd   :  { %90 = vadd.xlane.f32.xlu1 %v76_v38  ;;  %v75_v53 = vmul.f32 %v71_v48, %v63_v49 }
   0xe   :  { %80 = vadd.xlane.f32.xlu0 %v72_v41  ;;  %v96_v54 = vsel %vm86_vm0, %v79_v52, 0.0 }
   0xf   :  { %v87_v55 = vsel %vm86_vm0, %v75_v53, 0.0 }
  0x11   :  { %92 = vadd.xlane.f32.xlu1 %v77_v42 }
  0x12   :  { %82 = vadd.xlane.f32.xlu0 %v73_v44 }
  0x15   :  { %94 = vadd.xlane.f32.xlu1 %v78_v50 }
  0x16   :  { %84 = vadd.xlane.f32.xlu0 %v74_v51 }
  0x19   :  { %97 = vadd.xlane.f32.xlu1 %v96_v54 }
  0x1a   :  { %88 = vadd.xlane.f32.xlu0 %v87_v55 }
  0x9a   :  { %v91_v56 = vpop.xlane.xlu1 %90 }
  0x9b   :  { %v81_v57 = vpop.xlane.xlu0 %80 }
  0x9e   :  { %v93_v58 = vpop.xlane.xlu1 %92 }
  0x9f   :  { %v83_v59 = vpop.xlane.xlu0 %82  ;;  %v109_v62 = vadd.f32 %v93_v58, %v91_v56 }
  0xa0   :  { %v99_v63 = vadd.f32 %v83_v59, %v81_v57 }
  0xa2   :  { %v95_v60 = vpop.xlane.xlu1 %94 }
  0xa3   :  { %v85_v61 = vpop.xlane.xlu0 %84  ;;  %v110_v0 = vadd.f32 %v109_v62, %v95_v60 }
  0xa4   :  { %v100_v2 = vadd.f32 %v99_v63, %v85_v61 }
  0xa6   :  { %v98_v1 = vpop.xlane.xlu1 %97 }
  0xa7   :  { %v111_v3 = vsel %vm86_vm0, %v98_v1, 0.0  ;;  %v89_v4 = vpop.xlane.xlu0 %88 }
  0xa8   :  { %v112_v5 = vadd.f32 %v111_v3, %v110_v0  ;;  %v101_v6 = vsel %vm86_vm0, %v89_v4, 0.0 }
  0xa9   :  { %v102_v7 = vadd.f32 %v101_v6, %v100_v2 }
  0xaa   :  { %v113_v8 = vrot.slane %v112_v5, 4 }
  0xab   :  { %v103_v9 = vrot.slane %v102_v7, 4 }
  0xac   :  { %v114_v10 = vadd.f32 %v113_v8, %v112_v5 }
  0xad   :  { %v104_v11 = vadd.f32 %v103_v9, %v102_v7 }
  0xae   :  { %v115_v12 = vrot.slane %v114_v10, 2 }
  0xaf   :  { %v105_v13 = vrot.slane %v104_v11, 2 }
  0xb0   :  { %v116_v14 = vadd.f32 %v115_v12, %v114_v10 }
  0xb1   :  { %v106_v15 = vadd.f32 %v105_v13, %v104_v11 }
  0xb2   :  { %v117_v16 = vrot.slane %v116_v14, 1 }
  0xb3   :  { %v107_v18 = vrot.slane %v106_v15, 1 }
  0xb4   :  { %v118_v19 = vadd.f32 %v117_v16, %v116_v14 }
  0xb5   :  { %v108_v20 = vadd.f32 %v107_v18, %v106_v15 }
  0xb6   :  { %v122_v21 = vadd.f32 %v120_v17, %v118_v19 }
  0xb7   :  { %v121_v22 = vadd.f32 %v120_v17, %v108_v20 }
  0xb9   :  { %v126_v23 = vsel %vm125_vm1, %v122_v21, %v121_v22 }
  0xba   :  { %129 = vst.msk [vmem:[%s217_s4] sm:$0x3] %vm128_vm2, %v126_v23 }

// kernel: discriminator_forward.6
= control target key start
LH: loop header
LB: loop body
LE: loop exit
PB: predicated region body
PF: predicated region fallthrough
CT: control target
= control target key end

     0   :  { %vm1026_vm1 = vcmask 1041408   ;;  %vm1055_vm2 = vcmask 1040384   ;;  %s1793_s1 = inlined_call_operand.vmem [shape: bf16[1024,128], index: 1, kind: input, shape index: {}]   ;;  %s1794_s0 = inlined_call_operand.vmem [shape: bf16[50,1024], index: 0, kind: input, shape index: {}]   ;;  %s1795_s5 = inlined_call_operand.vmem [shape: f32[2,128], index: 5, kind: output, shape index: {1}]   ;;  %s1796_s4 = inlined_call_operand.vmem [shape: f32[50,128], index: 4, kind: output, shape index: {0}]   ;;  %s1797_s2 = inlined_call_operand.vmem [shape: f32[1,128], index: 2, kind: input, shape index: {}]   ;;  %s1798_s3 = inlined_call_operand.vmem [shape: f32[1,128], index: 3, kind: input, shape index: {}]  }
   0x1   :  { %v1349_v0 = vld [vmem:[%s1793_s1 + $0x40] sm:$0xff]   ;;  %v1353_v4 = vld [vmem:[%s1793_s1 + $0x48] sm:$0xff]   ;;  %v1357_v8 = vld [vmem:[%s1793_s1 + $0x50] sm:$0xff]  }
   0x2   :  { %v1350_v1 = vld [vmem:[%s1793_s1 + $0xc0] sm:$0xff]   ;;  %1188 = vmatprep.subr.bf16.mxu0 %v1349_v0  ;;  %v1354_v5 = vld [vmem:[%s1793_s1 + $0xc8] sm:$0xff]   ;;  %v1358_v9 = vld [vmem:[%s1793_s1 + $0xd0] sm:$0xff]  }
   0x3   :  { %v1351_v2 = vld [vmem:[%s1793_s1] sm:$0xff]   ;;  %1228 = vmatprep.subr.bf16.mxu1 %v1350_v1  ;;  %v1355_v6 = vld [vmem:[%s1793_s1 + $0x8] sm:$0xff]   ;;  %v1359_v10 = vld [vmem:[%s1793_s1 + $0x10] sm:$0xff]  }
   0x4   :  { %v1352_v3 = vld [vmem:[%s1793_s1 + $0x80] sm:$0xff]   ;;  %1189 = vmatpush3.bf16.msra.mxu0 %v1351_v2  ;;  %v1356_v7 = vld [vmem:[%s1793_s1 + $0x88] sm:$0xff]   ;;  %v1360_v11 = vld [vmem:[%s1793_s1 + $0x90] sm:$0xff]  }
   0x5   :  { %1229 = vmatpush3.bf16.msra.mxu1 %v1352_v3  ;;  %1190 = vmatprep.subr.bf16.mxu0 %v1353_v4  ;;  %v1361_v12 = vld [vmem:[%s1793_s1 + $0x58] sm:$0xff]   ;;  %v1365_v16 = vld [vmem:[%s1793_s1 + $0x60] sm:$0xff]   ;;  %v1369_v20 = vld [vmem:[%s1793_s1 + $0x68] sm:$0xff]  }
   0x6   :  { %1230 = vmatprep.subr.bf16.mxu1 %v1354_v5  ;;  %v1362_v13 = vld [vmem:[%s1793_s1 + $0xd8] sm:$0xff]   ;;  %v1366_v17 = vld [vmem:[%s1793_s1 + $0xe0] sm:$0xff]   ;;  %v1370_v21 = vld [vmem:[%s1793_s1 + $0xe8] sm:$0xff]  }
   0x7   :  { %v1363_v14 = vld [vmem:[%s1793_s1 + $0x18] sm:$0xff]   ;;  %v1367_v18 = vld [vmem:[%s1793_s1 + $0x20] sm:$0xff]   ;;  %v1371_v22 = vld [vmem:[%s1793_s1 + $0x28] sm:$0xff]  }
   0x8   :  { %1191 = vmatpush3.bf16.msra.mxu0 %v1355_v6  ;;  %v1364_v15 = vld [vmem:[%s1793_s1 + $0x98] sm:$0xff]   ;;  %v1368_v19 = vld [vmem:[%s1793_s1 + $0xa0] sm:$0xff]   ;;  %v1372_v23 = vld [vmem:[%s1793_s1 + $0xa8] sm:$0xff]  }
   0x9   :  { %1231 = vmatpush3.bf16.msra.mxu1 %v1356_v7  ;;  %1192 = vmatprep.subr.bf16.mxu0 %v1357_v8  ;;  %v1373_v24 = vld [vmem:[%s1793_s1 + $0x70] sm:$0xff]   ;;  %v1377_v28 = vld [vmem:[%s1793_s1 + $0x78] sm:$0xff]   ;;  %v25_v32 = vld [vmem:[%s1794_s0] sm:$0xff] }
   0xa   :  { %1232 = vmatprep.subr.bf16.mxu1 %v1358_v9  ;;  %v1374_v25 = vld [vmem:[%s1793_s1 + $0xf0] sm:$0xff]   ;;  %v1378_v29 = vld [vmem:[%s1793_s1 + $0xf8] sm:$0xff]   ;;  %v29_v33 = vld [vmem:[%s1794_s0 + $0x20] sm:$0xff] }
   0xb   :  { %v1375_v26 = vld [vmem:[%s1793_s1 + $0x30] sm:$0xff]   ;;  %v1379_v30 = vld [vmem:[%s1793_s1 + $0x38] sm:$0xff]   ;;  %v26_v34 = vld [vmem:[%s1794_s0 + $0x8] sm:$0xff]  ;;  %v1092_v35 = vcombine.low %v25_v32, %v29_v33  ;;  %v1093_v36 = vcombine.high %v25_v32, %v29_v33 }
   0xc   :  { %1193 = vmatpush3.bf16.msra.mxu0 %v1359_v10  ;;  %v1376_v27 = vld [vmem:[%s1793_s1 + $0xb0] sm:$0xff]   ;;  %v1380_v31 = vld [vmem:[%s1793_s1 + $0xb8] sm:$0xff]   ;;  %v30_v37 = vld [vmem:[%s1794_s0 + $0x28] sm:$0xff] }
   0xd   :  { %1233 = vmatpush3.bf16.msra.mxu1 %v1360_v11  ;;  %1194 = vmatprep.subr.bf16.mxu0 %v1361_v12  ;;  %v1094_v38 = vcombine.low %v26_v34, %v30_v37  ;;  %v1095_v39 = vcombine.high %v26_v34, %v30_v37  ;;  %v1381_v40 = vld [vmem:[%s1793_s1 + $0x140] sm:$0xff]   ;;  %v1385_v44 = vld [vmem:[%s1793_s1 + $0x148] sm:$0xff]   ;;  %v1389_v56 = vld [vmem:[%s1793_s1 + $0x150] sm:$0xff]  }
   0xe   :  { %1234 = vmatprep.subr.bf16.mxu1 %v1362_v13  ;;  %745 = vmatprep.mubr.bf16.mxu0 %v1093_v36  ;;  %v1382_v41 = vld [vmem:[%s1793_s1 + $0x1c0] sm:$0xff]   ;;  %v1386_v45 = vld [vmem:[%s1793_s1 + $0x1c8] sm:$0xff]   ;;  %v1390_v57 = vld [vmem:[%s1793_s1 + $0x1d0] sm:$0xff]  }
   0xf   :  { %809 = vmatprep.mubr.bf16.mxu1 %v1095_v39  ;;  %v1383_v42 = vld [vmem:[%s1793_s1 + $0x100] sm:$0xff]   ;;  %v1387_v46 = vld [vmem:[%s1793_s1 + $0x108] sm:$0xff]   ;;  %v1391_v58 = vld [vmem:[%s1793_s1 + $0x110] sm:$0xff]  }
  0x10   :  { %1195 = vmatpush3.bf16.msra.mxu0 %v1363_v14  ;;  %v1384_v43 = vld [vmem:[%s1793_s1 + $0x180] sm:$0xff]   ;;  %v1388_v47 = vld [vmem:[%s1793_s1 + $0x188] sm:$0xff]   ;;  %v1392_v59 = vld [vmem:[%s1793_s1 + $0x190] sm:$0xff]  }
  0x11   :  { %1235 = vmatpush3.bf16.msra.mxu1 %v1364_v15  ;;  %1196 = vmatprep.subr.bf16.mxu0 %v1365_v16  ;;  %v33_v48 = vld [vmem:[%s1794_s0 + $0x40] sm:$0xff]  ;;  %v34_v51 = vld [vmem:[%s1794_s0 + $0x48] sm:$0xff]  ;;  %v1393_v60 = vld [vmem:[%s1793_s1 + $0x158] sm:$0xff]  }
  0x12   :  { %1236 = vmatprep.subr.bf16.mxu1 %v1366_v17  ;;  %v37_v49 = vld [vmem:[%s1794_s0 + $0x60] sm:$0xff]  ;;  %v38_v52 = vld [vmem:[%s1794_s0 + $0x68] sm:$0xff]  ;;  %v1394_v61 = vld [vmem:[%s1793_s1 + $0x1d8] sm:$0xff]  }
  0x13   :  { %v1101_v50 = vcombine.high %v33_v48, %v37_v49  ;;  %v1100_v53 = vcombine.low %v33_v48, %v37_v49  ;;  %v1103_v54 = vcombine.high %v34_v51, %v38_v52  ;;  %v1102_v55 = vcombine.low %v34_v51, %v38_v52  ;;  %v1395_v62 = vld [vmem:[%s1793_s1 + $0x118] sm:$0xff]   ;;  %v41_v0 = vld [vmem:[%s1794_s0 + $0x80] sm:$0xff]  ;;  %v42_v2 = vld [vmem:[%s1794_s0 + $0x88] sm:$0xff] }
  0x14   :  { %1197 = vmatpush3.bf16.msra.mxu0 %v1367_v18  ;;  %v1396_v63 = vld [vmem:[%s1793_s1 + $0x198] sm:$0xff]   ;;  %v45_v1 = vld [vmem:[%s1794_s0 + $0xa0] sm:$0xff]  ;;  %v46_v3 = vld [vmem:[%s1794_s0 + $0xa8] sm:$0xff] }
  0x15   :  { %1237 = vmatpush3.bf16.msra.mxu1 %v1368_v19  ;;  %1198 = vmatprep.subr.bf16.mxu0 %v1369_v20  ;;  %v1109_v4 = vcombine.high %v41_v0, %v45_v1  ;;  %v1111_v5 = vcombine.high %v42_v2, %v46_v3  ;;  %v1108_v6 = vcombine.low %v41_v0, %v45_v1  ;;  %v1397_v8 = vld [vmem:[%s1793_s1 + $0x160] sm:$0xff]   ;;  %v1401_v12 = vld [vmem:[%s1793_s1 + $0x168] sm:$0xff]   ;;  %v28_v32 = vld [vmem:[%s1794_s0 + $0x18] sm:$0xff] }
  0x16   :  { %1238 = vmatprep.subr.bf16.mxu1 %v1370_v21  ;;  %v1110_v7 = vcombine.low %v42_v2, %v46_v3  ;;  %v1398_v9 = vld [vmem:[%s1793_s1 + $0x1e0] sm:$0xff]   ;;  %v1402_v13 = vld [vmem:[%s1793_s1 + $0x1e8] sm:$0xff]   ;;  %v1409_v21 = vld [vmem:[%s1793_s1 + $0x170] sm:$0xff]  }
  0x17   :  { %v1399_v10 = vld [vmem:[%s1793_s1 + $0x120] sm:$0xff]   ;;  %v1403_v14 = vld [vmem:[%s1793_s1 + $0x128] sm:$0xff]   ;;  %v32_v33 = vld [vmem:[%s1794_s0 + $0x38] sm:$0xff] }
  0x18   :  { %1199 = vmatpush3.bf16.msra.mxu0 %v1371_v22  ;;  %v1400_v11 = vld [vmem:[%s1793_s1 + $0x1a0] sm:$0xff]   ;;  %v1404_v15 = vld [vmem:[%s1793_s1 + $0x1a8] sm:$0xff]   ;;  %v1098_v36 = vcombine.low %v28_v32, %v32_v33  ;;  %v35_v37 = vld [vmem:[%s1794_s0 + $0x50] sm:$0xff] }
  0x19   :  { %1239 = vmatpush3.bf16.msra.mxu1 %v1372_v23  ;;  %1200 = vmatprep.subr.bf16.mxu0 %v1373_v24  ;;  %v49_v16 = vld [vmem:[%s1794_s0 + $0xc0] sm:$0x11]  ;;  %v50_v17 = vld [vmem:[%s1794_s0 + $0xc8] sm:$0x11]  ;;  %v1410_v23 = vld [vmem:[%s1793_s1 + $0x1f0] sm:$0xff]  }
  0x1a   :  { %1240 = vmatprep.subr.bf16.mxu1 %v1374_v25  ;;  %v1117_v18 = vcombine.high %v49_v16, %v49_v16  ;;  %v1119_v19 = vcombine.high %v50_v17, %v50_v17  ;;  %v1116_v20 = vcombine.low %v49_v16, %v49_v16  ;;  %v1118_v22 = vcombine.low %v50_v17, %v50_v17  ;;  %v1411_v24 = vld [vmem:[%s1793_s1 + $0x130] sm:$0xff]   ;;  %v36_v39 = vld [vmem:[%s1794_s0 + $0x58] sm:$0xff] }
  0x1b   :  { %v1412_v25 = vld [vmem:[%s1793_s1 + $0x1b0] sm:$0xff]  }
  0x1c   :  { %1201 = vmatpush3.bf16.msra.mxu0 %v1375_v26  ;;  %v1413_v26 = vld [vmem:[%s1793_s1 + $0x178] sm:$0xff]   ;;  %v51_v52 = vld [vmem:[%s1794_s0 + $0xd0] sm:$0x11] }
  0x1d   :  { %1241 = vmatpush3.bf16.msra.mxu1 %v1376_v27  ;;  %1202 = vmatprep.subr.bf16.mxu0 %v1377_v28  ;;  %v1414_v27 = vld [vmem:[%s1793_s1 + $0x1f8] sm:$0xff]  }
  0x1e   :  { %1242 = vmatprep.subr.bf16.mxu1 %v1378_v29  ;;  %v1415_v28 = vld [vmem:[%s1793_s1 + $0x138] sm:$0xff]  }
  0x1f   :  { %v1416_v29 = vld [vmem:[%s1793_s1 + $0x1b8] sm:$0xff]  }
  0x20   :  { %1203 = vmatpush3.bf16.msra.mxu0 %v1379_v30  ;;  %v27_v30 = vld [vmem:[%s1794_s0 + $0x10] sm:$0xff] }
  0x21   :  { %1243 = vmatpush3.bf16.msra.mxu1 %v1380_v31  ;;  %1268 = vmatprep.subr.bf16.mxu0 %v1381_v40  ;;  %v31_v31 = vld [vmem:[%s1794_s0 + $0x30] sm:$0xff]  ;;  %v1099_v40 = vcombine.high %v28_v32, %v32_v33 }
  0x22   :  { %1308 = vmatprep.subr.bf16.mxu1 %v1382_v41  ;;  %v1096_v34 = vcombine.low %v27_v30, %v31_v31 }
  0x23   :  { %746 = vmatmul.mubr.bf16.vlgmr.msra.gmra.mrb[0].mxu0 %v1092_v35  ;;  %v1097_v35 = vcombine.high %v27_v30, %v31_v31 }
  0x24   :  { %810 = vmatmul.mubr.bf16.vlgmr.msra.gmra.mrb[0].mxu1 %v1094_v38  ;;  %1269 = vmatpush3.bf16.msra.mxu0 %v1383_v42  ;;  %v39_v38 = vld [vmem:[%s1794_s0 + $0x70] sm:$0xff]  ;;  %v40_v42 = vld [vmem:[%s1794_s0 + $0x78] sm:$0xff] }
  0x25   :  { %1309 = vmatpush3.bf16.msra.mxu1 %v1384_v43  ;;  %1270 = vmatprep.subr.bf16.mxu0 %v1385_v44  ;;  %v1105_v41 = vcombine.high %v35_v37, %v39_v38  ;;  %v1107_v43 = vcombine.high %v36_v39, %v40_v42  ;;  %v43_v44 = vld [vmem:[%s1794_s0 + $0x90] sm:$0xff]  ;;  %v1104_v48 = vcombine.low %v35_v37, %v39_v38 }
  0x26   :  { %1310 = vmatprep.subr.bf16.mxu1 %v1386_v45  ;;  %753 = vmatprep.mubr.bf16.mxu0 %v1101_v50  ;;  %v47_v45 = vld [vmem:[%s1794_s0 + $0xb0] sm:$0xff]  ;;  %v1106_v49 = vcombine.low %v36_v39, %v40_v42 }
  0x27   :  { %817 = vmatprep.mubr.bf16.mxu1 %v1103_v54  ;;  %v1113_v50 = vcombine.high %v43_v44, %v47_v45  ;;  %v1112_v54 = vcombine.low %v43_v44, %v47_v45 }
  0x28   :  { %1271 = vmatpush3.bf16.msra.mxu0 %v1387_v46  ;;  %v44_v46 = vld [vmem:[%s1794_s0 + $0x98] sm:$0xff] }
  0x29   :  { %1311 = vmatpush3.bf16.msra.mxu1 %v1388_v47  ;;  %1272 = vmatprep.subr.bf16.mxu0 %v1389_v56  ;;  %v48_v47 = vld [vmem:[%s1794_s0 + $0xb8] sm:$0xff]  ;;  %v1121_v56 = vcombine.high %v51_v52, %v51_v52 }
  0x2a   :  { %1312 = vmatprep.subr.bf16.mxu1 %v1390_v57  ;;  %v1115_v51 = vcombine.high %v44_v46, %v48_v47 }
  0x2b   :  { %754 = vmatmul.mubr.bf16.gmra.mrb[4].mxu0 %v1100_v53  ;;  %v52_v53 = vld [vmem:[%s1794_s0 + $0xd8] sm:$0x11] }
  0x2c   :  { %818 = vmatmul.mubr.bf16.gmra.mrb[4].mxu1 %v1102_v55  ;;  %1273 = vmatpush3.bf16.msra.mxu0 %v1391_v58  ;;  %v1114_v55 = vcombine.low %v44_v46, %v48_v47  ;;  %v1123_v57 = vcombine.high %v52_v53, %v52_v53  ;;  %v1120_v58 = vcombine.low %v51_v52, %v51_v52 }
  0x2d   :  { %1313 = vmatpush3.bf16.msra.mxu1 %v1392_v59  ;;  %1274 = vmatprep.subr.bf16.mxu0 %v1393_v60  ;;  %v1122_v59 = vcombine.low %v52_v53, %v52_v53  ;;  %v1423_v60 = vmov 0.0  }
  0x2e   :  { %1314 = vmatprep.subr.bf16.mxu1 %v1394_v61  ;;  %761 = vmatprep.mubr.bf16.mxu0 %v1109_v4  ;;  %24 = vst [vmem:[%s1795_s5] sm:$0x3] %v1423_v60 }
  0x2f   :  { %825 = vmatprep.mubr.bf16.mxu1 %v1111_v5 }
  0x30   :  { %1275 = vmatpush3.bf16.msra.mxu0 %v1395_v62 }
  0x31   :  { %1315 = vmatpush3.bf16.msra.mxu1 %v1396_v63  ;;  %1276 = vmatprep.subr.bf16.mxu0 %v1397_v8 }
  0x32   :  { %1316 = vmatprep.subr.bf16.mxu1 %v1398_v9 }
  0x33   :  { %762 = vmatmul.mubr.bf16.gmra.mrb[8].mxu0 %v1108_v6 }
  0x34   :  { %826 = vmatmul.mubr.bf16.gmra.mrb[8].mxu1 %v1110_v7  ;;  %1277 = vmatpush3.bf16.msra.mxu0 %v1399_v10 }
  0x35   :  { %1317 = vmatpush3.bf16.msra.mxu1 %v1400_v11  ;;  %1278 = vmatprep.subr.bf16.mxu0 %v1401_v12 }
  0x36   :  { %1318 = vmatprep.subr.bf16.mxu1 %v1402_v13  ;;  %769 = vmatprep.mubr.bf16.mxu0 %v1117_v18 }
  0x37   :  { %833 = vmatprep.mubr.bf16.mxu1 %v1119_v19 }
  0x38   :  { %1279 = vmatpush3.bf16.msra.mxu0 %v1403_v14 }
  0x39   :  { %1319 = vmatpush3.bf16.msra.mxu1 %v1404_v15  ;;  %1280 = vmatprep.subr.bf16.mxu0 %v1409_v21 }
  0x3a   :  { %1320 = vmatprep.subr.bf16.mxu1 %v1410_v23 }
  0x3b   :  { %770 = vmatmul.mubr.bf16.gmra.mrb[12].mxu0 %v1116_v20 }
  0x3c   :  { %834 = vmatmul.mubr.bf16.gmra.mrb[12].mxu1 %v1118_v22  ;;  %1281 = vmatpush3.bf16.msra.mxu0 %v1411_v24 }
  0x3d   :  { %1321 = vmatpush3.bf16.msra.mxu1 %v1412_v25  ;;  %1282 = vmatprep.subr.bf16.mxu0 %v1413_v26 }
  0x3e   :  { %1322 = vmatprep.subr.bf16.mxu1 %v1414_v27  ;;  %873 = vmatprep.mubr.bf16.mxu0 %v1097_v35 }
  0x3f   :  { %937 = vmatprep.mubr.bf16.mxu1 %v1099_v40 }
  0x40   :  { %1283 = vmatpush3.bf16.msra.mxu0 %v1415_v28 }
  0x41   :  { %1323 = vmatpush3.bf16.msra.mxu1 %v1416_v29 }
  0x43   :  { %874 = vmatmul.mubr.bf16.vlgmr.msra.gmra.mrb[16].mxu0 %v1096_v34 }
  0x44   :  { %938 = vmatmul.mubr.bf16.vlgmr.msra.gmra.mrb[16].mxu1 %v1098_v36  ;;  %881 = vmatprep.mubr.bf16.mxu0 %v1105_v41 }
  0x45   :  { %945 = vmatprep.mubr.bf16.mxu1 %v1107_v43 }
  0x4b   :  { %882 = vmatmul.mubr.bf16.gmra.mrb[20].mxu0 %v1104_v48 }
  0x4c   :  { %946 = vmatmul.mubr.bf16.gmra.mrb[20].mxu1 %v1106_v49  ;;  %889 = vmatprep.mubr.bf16.mxu0 %v1113_v50 }
  0x4d   :  { %953 = vmatprep.mubr.bf16.mxu1 %v1115_v51 }
  0x53   :  { %890 = vmatmul.mubr.bf16.gmra.mrb[24].mxu0 %v1112_v54 }
  0x54   :  { %954 = vmatmul.mubr.bf16.gmra.mrb[24].mxu1 %v1114_v55  ;;  %897 = vmatprep.mubr.bf16.mxu0 %v1121_v56 }
  0x55   :  { %961 = vmatprep.mubr.bf16.mxu1 %v1123_v57 }
  0x5b   :  { %898 = vmatmul.mubr.bf16.gmra.mrb[28].mxu0 %v1120_v58 }
  0x5c   :  { %962 = vmatmul.mubr.bf16.gmra.mrb[28].mxu1 %v1122_v59 }
  0xf6   :  { %v1204_v61 = vpop.f32.mrb[0].mxu0 }
  0xf7   :  { %v1244_v62 = vpop.f32.mrb[0].mxu1  ;;  %v1205_v63 = vpop.f32.mrb[1].mxu0 }
  0xf8   :  { %v1206_v0 = vadd.f32 %v1205_v63, %v1204_v61  ;;  %v1245_v1 = vpop.f32.mrb[1].mxu1  ;;  %v1207_v2 = vpop.f32.mrb[2].mxu0 }
  0xf9   :  { %v1246_v3 = vadd.f32 %v1245_v1, %v1244_v62  ;;  %v1247_v4 = vpop.f32.mrb[2].mxu1  ;;  %v1208_v5 = vpop.f32.mrb[3].mxu0 }
  0xfa   :  { %v1209_v6 = vadd.f32 %v1208_v5, %v1207_v2  ;;  %v1248_v7 = vpop.f32.mrb[3].mxu1 }
  0xfb   :  { %v812_v8 = vadd.f32 %v1246_v3, %v1206_v0  ;;  %v1249_v9 = vadd.f32 %v1248_v7, %v1247_v4 }
  0xfd   :  { %v815_v10 = vadd.f32 %v1249_v9, %v1209_v6 }
  0xfe   :  { %v1210_v11 = vpop.f32.mrb[4].mxu0 }
  0xff   :  { %v1250_v12 = vpop.f32.mrb[4].mxu1  ;;  %v1211_v13 = vpop.f32.mrb[5].mxu0 }
 0x100   :  { %v1212_v14 = vadd.f32 %v1211_v13, %v1210_v11  ;;  %v1251_v15 = vpop.f32.mrb[5].mxu1  ;;  %v1213_v16 = vpop.f32.mrb[6].mxu0 }
 0x101   :  { %v1252_v17 = vadd.f32 %v1251_v15, %v1250_v12  ;;  %v1253_v18 = vpop.f32.mrb[6].mxu1  ;;  %v1214_v19 = vpop.f32.mrb[7].mxu0 }
 0x102   :  { %v1215_v20 = vadd.f32 %v1214_v19, %v1213_v16  ;;  %v1254_v21 = vpop.f32.mrb[7].mxu1 }
 0x103   :  { %v820_v22 = vadd.f32 %v1252_v17, %v1212_v14  ;;  %v1255_v23 = vadd.f32 %v1254_v21, %v1253_v18 }
 0x105   :  { %v1733_v24 = vadd.f32 %v1255_v23, %v1215_v20 }
 0x106   :  { %v1216_v25 = vpop.f32.mrb[8].mxu0 }
 0x107   :  { %v1256_v26 = vpop.f32.mrb[8].mxu1  ;;  %v1217_v27 = vpop.f32.mrb[9].mxu0 }
 0x108   :  { %v1257_v28 = vpop.f32.mrb[9].mxu1  ;;  %v1218_v29 = vadd.f32 %v1217_v27, %v1216_v25  ;;  %v1219_v31 = vpop.f32.mrb[10].mxu0 }
 0x109   :  { %v1258_v30 = vadd.f32 %v1257_v28, %v1256_v26  ;;  %v1259_v32 = vpop.f32.mrb[10].mxu1  ;;  %v1220_v33 = vpop.f32.mrb[11].mxu0 }
 0x10a   :  { %v1260_v34 = vpop.f32.mrb[11].mxu1  ;;  %v1221_v36 = vadd.f32 %v1220_v33, %v1219_v31 }
 0x10b   :  { %v1735_v35 = vadd.f32 %v1258_v30, %v1218_v29  ;;  %v1261_v37 = vadd.f32 %v1260_v34, %v1259_v32  ;;  %v977_v29 = vlaneseq }
 0x10d   :  { %v1737_v38 = vadd.f32 %v1261_v37, %v1221_v36 }
 0x10e   :  { %v1222_v39 = vpop.f32.mrb[12].mxu0 }
 0x10f   :  { %v1262_v40 = vpop.f32.mrb[12].mxu1  ;;  %v1223_v41 = vpop.f32.mrb[13].mxu0 }
 0x110   :  { %v1263_v42 = vpop.f32.mrb[13].mxu1  ;;  %v1224_v43 = vadd.f32 %v1223_v41, %v1222_v39  ;;  %v1225_v45 = vpop.f32.mrb[14].mxu0 }
 0x111   :  { %v1264_v44 = vadd.f32 %v1263_v42, %v1262_v40  ;;  %v1265_v46 = vpop.f32.mrb[14].mxu1  ;;  %v1226_v47 = vpop.f32.mrb[15].mxu0 }
 0x112   :  { %v1266_v48 = vpop.f32.mrb[15].mxu1 }
 0x113   :  { %v1739_v49 = vadd.f32 %v1264_v44, %v1224_v43  ;;  %v1755_v44 = vshrl.u32 %v977_v29, 7 }
 0x116   :  { %v1284_v50 = vpop.f32.mrb[16].mxu0 }
 0x117   :  { %v1324_v51 = vpop.f32.mrb[16].mxu1  ;;  %v1285_v52 = vpop.f32.mrb[17].mxu0 }
 0x118   :  { %v1286_v53 = vadd.f32 %v1285_v52, %v1284_v50  ;;  %v1325_v54 = vpop.f32.mrb[17].mxu1  ;;  %v1287_v55 = vpop.f32.mrb[18].mxu0 }
 0x119   :  { %v1326_v56 = vadd.f32 %v1325_v54, %v1324_v51  ;;  %v1327_v57 = vpop.f32.mrb[18].mxu1  ;;  %v1288_v58 = vpop.f32.mrb[19].mxu0 }
 0x11a   :  { %v876_v59 = vadd.f32 %v1286_v53, %v812_v8  ;;  %v1289_v60 = vadd.f32 %v1288_v58, %v1287_v55  ;;  %v1328_v61 = vpop.f32.mrb[19].mxu1 }
 0x11b   :  { %v1329_v62 = vadd.f32 %v1328_v61, %v1327_v57 }
 0x11c   :  { %v940_v63 = vadd.f32 %v1326_v56, %v876_v59  ;;  %v879_v0 = vadd.f32 %v1289_v60, %v815_v10 }
 0x11e   :  { %969 = vst [vmem:[%s1796_s4] sm:$0xff] %v940_v63  ;;  %v943_v1 = vadd.f32 %v1329_v62, %v879_v0  ;;  %v1290_v2 = vpop.f32.mrb[20].mxu0  ;;  %v1035_v5 = vmul.f32 %v940_v63, %v940_v63 }
 0x11f   :  { %v1330_v3 = vpop.f32.mrb[20].mxu1  ;;  %v1291_v4 = vpop.f32.mrb[21].mxu0 }
 0x120   :  { %970 = vst [vmem:[%s1796_s4 + $0x8] sm:$0xff] %v943_v1  ;;  %v1021_v6 = vadd.f32 %v943_v1, %v940_v63  ;;  %v1036_v7 = vmul.f32 %v943_v1, %v943_v1  ;;  %v1292_v8 = vadd.f32 %v1291_v4, %v1290_v2  ;;  %v1331_v9 = vpop.f32.mrb[21].mxu1  ;;  %v1293_v11 = vpop.f32.mrb[22].mxu0 }
 0x121   :  { %v1332_v12 = vadd.f32 %v1331_v9, %v1330_v3  ;;  %v1333_v10 = vpop.f32.mrb[22].mxu1  ;;  %v1294_v13 = vpop.f32.mrb[23].mxu0 }
 0x122   :  { %v1042_v14 = vadd.f32 %v1036_v7, %v1035_v5  ;;  %v884_v15 = vadd.f32 %v1292_v8, %v820_v22  ;;  %v1295_v16 = vadd.f32 %v1294_v13, %v1293_v11  ;;  %v1334_v17 = vpop.f32.mrb[23].mxu1 }
 0x123   :  { %v1335_v18 = vadd.f32 %v1334_v17, %v1333_v10 }
 0x124   :  { %v948_v19 = vadd.f32 %v1332_v12, %v884_v15  ;;  %v887_v20 = vadd.f32 %v1295_v16, %v1733_v24 }
 0x126   :  { %971 = vst [vmem:[%s1796_s4 + $0x10] sm:$0xff] %v948_v19  ;;  %v1022_v21 = vadd.f32 %v1021_v6, %v948_v19  ;;  %v1037_v23 = vmul.f32 %v948_v19, %v948_v19  ;;  %v951_v25 = vadd.f32 %v1335_v18, %v887_v20  ;;  %v1296_v26 = vpop.f32.mrb[24].mxu0  ;;  %v1057_v19 = vld [vmem:[%s1795_s5] sm:$0x3] }
 0x127   :  { %v1336_v27 = vpop.f32.mrb[24].mxu1  ;;  %v1297_v28 = vpop.f32.mrb[25].mxu0 }
 0x128   :  { %v1043_v30 = vadd.f32 %v1042_v14, %v1037_v23  ;;  %972 = vst [vmem:[%s1796_s4 + $0x18] sm:$0xff] %v951_v25  ;;  %v1023_v22 = vadd.f32 %v1022_v21, %v951_v25  ;;  %v1038_v31 = vmul.f32 %v951_v25, %v951_v25  ;;  %v1298_v32 = vadd.f32 %v1297_v28, %v1296_v26  ;;  %v1337_v24 = vpop.f32.mrb[25].mxu1  ;;  %v1299_v33 = vpop.f32.mrb[26].mxu0 }
 0x129   :  { %v1338_v34 = vadd.f32 %v1337_v24, %v1336_v27  ;;  %v1339_v36 = vpop.f32.mrb[26].mxu1  ;;  %v1300_v37 = vpop.f32.mrb[27].mxu0  ;;  %v1073_v24 = vld [vmem:[%s1798_s3] sm:$0x1] }
 0x12a   :  { %v1044_v39 = vadd.f32 %v1043_v30, %v1038_v31  ;;  %v892_v40 = vadd.f32 %v1298_v32, %v1735_v35  ;;  %v1301_v41 = vadd.f32 %v1300_v37, %v1299_v33  ;;  %v1340_v42 = vpop.f32.mrb[27].mxu1  ;;  %v984_v35 = vadd.s32 48, %v1755_v44 }
 0x12b   :  { %v1341_v43 = vadd.f32 %v1340_v42, %v1339_v36 }
 0x12c   :  { %v956_v45 = vadd.f32 %v1338_v34, %v892_v40  ;;  %v895_v46 = vadd.f32 %v1301_v41, %v1737_v38  ;;  %vm999_vm0 = vcmp.lt.s32.totalorder %v984_v35, 50  ;;  %v1079_v34 = vsub.s32 0, %v1755_v44 }
 0x12e   :  { %973 = vst [vmem:[%s1796_s4 + $0x20] sm:$0xff] %v956_v45  ;;  %v1024_v47 = vadd.f32 %v1023_v22, %v956_v45  ;;  %v1039_v48 = vmul.f32 %v956_v45, %v956_v45  ;;  %v959_v50 = vadd.f32 %v1341_v43, %v895_v46  ;;  %v1302_v51 = vpop.f32.mrb[28].mxu0  ;;  %v1069_v22 = vld [vmem:[%s1797_s2] sm:$0x1] }
 0x12f   :  { %v1342_v52 = vpop.f32.mrb[28].mxu1  ;;  %v1303_v53 = vpop.f32.mrb[29].mxu0 }
 0x130   :  { %v1045_v54 = vadd.f32 %v1044_v39, %v1039_v48  ;;  %974 = vst [vmem:[%s1796_s4 + $0x28] sm:$0xff] %v959_v50  ;;  %v1025_v55 = vadd.f32 %v1024_v47, %v959_v50  ;;  %v1040_v56 = vmul.f32 %v959_v50, %v959_v50  ;;  %v1304_v38 = vadd.f32 %v1303_v53, %v1302_v51  ;;  %v1343_v57 = vpop.f32.mrb[29].mxu1  ;;  %v1305_v58 = vpop.f32.mrb[30].mxu0 }
 0x131   :  { %v1344_v59 = vadd.f32 %v1343_v57, %v1342_v52  ;;  %v1345_v60 = vpop.f32.mrb[30].mxu1  ;;  %v1306_v61 = vpop.f32.mrb[31].mxu0 }
 0x132   :  { %v1046_v62 = vadd.f32 %v1045_v54, %v1040_v56  ;;  %v900_v63 = vadd.f32 %v1304_v38, %v1739_v49  ;;  %v1346_v0 = vpop.f32.mrb[31].mxu1 }
 0x134   :  { %v964_v1 = vadd.f32 %v1344_v59, %v900_v63 }
 0x136   :  { %975 = vst [vmem:[%s1796_s4 + $0x30] sm:$0x3] %v964_v1  ;;  %v1020_v2 = vsel %vm999_vm0, %v964_v1, 0.0 }
 0x137   :  { %v1027_v3 = vsel %vm1026_vm1, %v1020_v2, 0.0  ;;  %v1041_v4 = vmul.f32 %v1020_v2, %v1020_v2 }
 0x138   :  { %v1028_v5 = vadd.f32 %v1027_v3, %v1025_v55 }
 0x139   :  { %v1047_v6 = vsel %vm1026_vm1, %v1041_v4, 0.0 }
 0x13a   :  { %v1029_v7 = vrot.slane %v1028_v5, 4  ;;  %v1048_v8 = vadd.f32 %v1047_v6, %v1046_v62 }
 0x13c   :  { %v1030_v9 = vadd.f32 %v1029_v7, %v1028_v5  ;;  %v1049_v11 = vrot.slane %v1048_v8, 4 }
 0x13e   :  { %v1031_v12 = vrot.slane %v1030_v9, 2  ;;  %v1050_v10 = vadd.f32 %v1049_v11, %v1048_v8 }
 0x140   :  { %v1032_v49 = vadd.f32 %v1031_v12, %v1030_v9  ;;  %v1051_v13 = vrot.slane %v1050_v10, 2 }
 0x142   :  { %v1033_v14 = vrot.slane %v1032_v49, 1  ;;  %v1052_v15 = vadd.f32 %v1051_v13, %v1050_v10 }
 0x144   :  { %v1053_v16 = vrot.slane %v1052_v15, 1  ;;  %v1034_v17 = vadd.f32 %v1033_v14, %v1032_v49 }
 0x146   :  { %v1054_v18 = vadd.f32 %v1053_v16, %v1052_v15 }
 0x148   :  { %v1056_v20 = vsel %vm1055_vm2, %v1034_v17, %v1054_v18 }
 0x149   :  { %v1058_v21 = vadd.f32 %v1057_v19, %v1056_v20 }
 0x14b   :  { %1059 = vst [vmem:[%s1795_s5] sm:$0x3] %v1058_v21 }
 0x152   :  { %v1063_v23 = vld [vmem:[%s1795_s5] sm:$0x1]  ;;  %v1065_v25 = vld [vmem:[%s1795_s5 + $0x1] sm:$0x1] }
 0x153   :  { %v1064_v26 = vmul.f32 0.02, %v1063_v23  ;;  %v1066_v27 = vmul.f32 0.02, %v1065_v25 }
 0x155   :  { %v1067_v28 = vmul.f32 %v1064_v26, %v1064_v26 }
 0x157   :  { %v1068_v29 = vsub.f32 %v1066_v27, %v1067_v28 }
 0x159   :  { %v1070_v30 = vadd.f32 1e-05, %v1068_v29 }
 0x15b   :  { %1421 = vrsqrt.f32 %v1070_v30 }
 0x165   :  { %v1422_v31 = vpop.eup %1421 }
 0x166   :  { %v1072_v32 = vmul.f32 %v1422_v31, %v1069_v22 }
 0x168   :  { %v1074_v33 = vmul.f32 %v1072_v32, %v1064_v26 }
 0x16a   :  { %v1075_v36 = vsub.f32 %v1073_v24, %v1074_v33 }
 0x16c   :  { %v1080_v37 = vrot.slane %v1075_v36, %v1079_v34 }
 0x16e   :  { %v1082_v39 = vsel %vm1055_vm2, %v1072_v32, %v1080_v37 }
 0x16f   :  { %1083 = vst [vmem:[%s1795_s5] sm:$0x3] %v1082_v39 }

</bundles_post_ra>
